<compile_context>
chip_gen: v7x
topology: tpu7x:2x2x1
jax: 0.10.0
libtpu: 0.0.40
codegen_flags: <defaults>
</compile_context>

<pallas_src>
from collections import OrderedDict

import jax
import jax.numpy as jnp
from jax.experimental import pallas as pl
from jax.experimental.pallas import tpu as pltpu


# ---------------------------- Pallas kernels -------------------------------

def _make_conv_kernel(taps, L, relu, fuse_add):
    """Fused conv kernel: in-kernel im2col (shifted slices) + MXU dots +
    bias (+ optional residual add, e.g. the FPN top-down path) (+ ReLU).

    Refs:
      w_ref : (T, Cout, Cin)  bf16   one (Cout, Cin) matrix per kernel tap
      b_ref : (Cout, 1)       f32
      x_ref : (P, Cin, Mp)    bf16   P flattened input phases for this image
      a_ref : (Cout, L)       bf16   optional fused add (FPN top-down)
      o_ref : (Cout, L)              output slab, M on the lane axis
    """

    def accumulate(w_ref, x_ref):
        acc = None
        for t, (phase, off) in enumerate(taps):
            xs = x_ref[phase, :, pl.ds(off, L)]          # (Cin, L), contiguous
            part = jnp.dot(w_ref[t], xs, preferred_element_type=jnp.float32)
            acc = part if acc is None else acc + part
        return acc

    def epilogue(acc, b_ref, o_ref, add_val):
        acc = acc + b_ref[...]                            # f32 bias, lane bcast
        if add_val is not None:
            acc = acc + add_val
        if relu:
            acc = jnp.maximum(acc, 0.0)
        o_ref[...] = acc.astype(o_ref.dtype)

    if fuse_add:
        def kernel(w_ref, b_ref, x_ref, a_ref, o_ref):
            epilogue(accumulate(w_ref, x_ref), b_ref, o_ref,
                     a_ref[...].astype(jnp.float32))
    else:
        def kernel(w_ref, b_ref, x_ref, o_ref):
            epilogue(accumulate(w_ref, x_ref), b_ref, o_ref, None)
    return kernel


# ---------------------------- kernel wrappers -------------------------------

def conv2d_nchw(x, w_oihw, b, *, stride=1, pad=0, relu=False, add=None,
                out_dtype=jnp.bfloat16):
    """Conv2d on NCHW input with PyTorch OIHW weights via one fused Pallas call.

    Supports the configs this model needs: 1x1/s1, 3x3/s1/p1, 3x3/s2/p1.
    `add` (optional, 1x1 convs only) is fused into the epilogue — used for the
    FPN "inner lateral + upsampled top-down" sum.
    """
    n, cin, h, w = x.shape
    cout, cin2, kh, kw = w_oihw.shape
    assert cin2 == cin and kh == kw
    k, s = kh, stride
    assert (k, s) in ((1, 1), (3, 1), (3, 2)), "unsupported conv config"

    x = x.astype(jnp.bfloat16)

    if k == 1:
        assert pad == 0
        ho, wo = h, w
        nrow, wrow = h, w
        phases = x.reshape(n, 1, cin, h * w)
        taps = [(0, 0)]
    else:
        ho = (h + 2 * pad - k) // s + 1
        wo = (w + 2 * pad - k) // s + 1
        if s == 1:
            # one extra bottom row keeps every shifted flat slice in-bounds
            hp, wp = h + 2 * pad + 1, w + 2 * pad
            xp = jnp.pad(x, ((0, 0), (0, 0), (pad, pad + 1), (pad, pad)))
            phases = xp.reshape(n, 1, cin, hp * wp)
            nrow, wrow = ho, wp
            taps = [(0, r * wp + c) for r in range(k) for c in range(k)]
        else:  # s == 2: space-to-depth so every tap is a contiguous slice
            assert h % 2 == 0 and w % 2 == 0
            hp, wp = h + 2 * pad + 2, w + 2 * pad
            xp = jnp.pad(x, ((0, 0), (0, 0), (pad, pad + 2), (pad, pad)))
            hh, wh = hp // 2, wp // 2
            phases = jnp.stack(
                [xp[:, :, dh::2, dw::2] for dh in range(2) for dw in range(2)],
                axis=1).reshape(n, 4, cin, hh * wh)
            nrow, wrow = ho, wh
            taps = [(2 * (r % 2) + (c % 2), (r // 2) * wh + (c // 2))
                    for r in range(k) for c in range(k)]

    L = nrow * wrow
    p_cnt, m_phase = phases.shape[1], phases.shape[3]
    # every shifted window must stay inside the flattened phase slab
    assert max(off for _, off in taps) + L <= m_phase

    wt = jnp.transpose(w_oihw, (2, 3, 0, 1)).reshape(k * k, cout, cin)
    wt = wt.astype(jnp.bfloat16)
    bb = b.reshape(cout, 1).astype(jnp.float32)

    fuse_add = add is not None
    args = [wt, bb, phases]
    in_specs = [
        pl.BlockSpec((k * k, cout, cin), lambda i: (0, 0, 0)),
        pl.BlockSpec((cout, 1), lambda i: (0, 0)),
        pl.BlockSpec((None, p_cnt, cin, m_phase), lambda i: (i, 0, 0, 0)),
    ]
    if fuse_add:
        assert k == 1, "fused residual add only used with 1x1 convs"
        assert add.shape == (n, cout, ho, wo)
        args.append(add.reshape(n, cout, L).astype(jnp.bfloat16))
        in_specs.append(pl.BlockSpec((None, cout, L), lambda i: (i, 0, 0)))

    kernel = _make_conv_kernel(taps, L, relu, fuse_add)

    # TODO(synk): for large feature maps, tile L into ~512-lane row bands with
    # halo'd manual DMA instead of one padded image per grid step (VMEM budget
    # on v7x); at these sizes one image per step fits trivially.
    out = pl.pallas_call(
        kernel,
        grid=(n,),
        out_shape=jax.ShapeDtypeStruct((n, cout, L), out_dtype),
        in_specs=in_specs,
        out_specs=pl.BlockSpec((None, cout, L), lambda i: (i, 0, 0)),
        compiler_params=pltpu.CompilerParams(
            dimension_semantics=("parallel",),
            vmem_limit_bytes=32 * 1024 * 1024),
    )(*args)

    # drop the junk columns that the flat-shift trick writes past wo
    return out.reshape(n, cout, nrow, wrow)[:, :, :, :wo]


def _nearest_upsample2x(x, out_hw):
    """Nearest-neighbour 2x upsample (XLA broadcast; feeds the fused add)."""
    n, c, h, w = x.shape
    # TODO(synk): general F.interpolate(mode="nearest", size=...) ratios; this
    # FPN only produces exact 2x steps.
    assert tuple(out_hw) == (2 * h, 2 * w)
    y = jnp.broadcast_to(x[:, :, :, None, :, None], (n, c, h, 2, w, 2))
    return y.reshape(n, c, 2 * h, 2 * w)


# ---------------------------- model (glue) ----------------------------------

IN_CHANNELS_LIST = [16, 32]
OUT_CHANNELS = 8


def init_params(key):
    ks = jax.random.split(key, 8)

    def w(k, shape, scale=0.1):
        return scale * jax.random.normal(k, shape, jnp.float32)

    p = {}
    # synthetic backbone ("layer1","layer2" -> return_layers {"layer1":"0","layer2":"1"})
    p["bb_w1"] = w(ks[0], (16, 4, 3, 3))
    p["bb_b1"] = jnp.zeros((16,), jnp.float32)
    p["bb_w2"] = w(ks[1], (32, 16, 3, 3))
    p["bb_b2"] = jnp.zeros((32,), jnp.float32)
    # FPN inner (1x1) and layer (3x3) blocks; zero biases like torchvision init
    p["inner_w"] = [w(ks[2 + i], (OUT_CHANNELS, cin, 1, 1))
                    for i, cin in enumerate(IN_CHANNELS_LIST)]
    p["inner_b"] = [jnp.zeros((OUT_CHANNELS,), jnp.float32) for _ in IN_CHANNELS_LIST]
    p["layer_w"] = [w(ks[4 + i], (OUT_CHANNELS, OUT_CHANNELS, 3, 3))
                    for i in range(len(IN_CHANNELS_LIST))]
    p["layer_b"] = [jnp.zeros((OUT_CHANNELS,), jnp.float32) for _ in IN_CHANNELS_LIST]
    return p


def backbone_with_fpn_forward(x_nchw, params):
    # body: IntermediateLayerGetter over the synthetic 2-stage backbone
    c1 = conv2d_nchw(x_nchw, params["bb_w1"], params["bb_b1"], stride=2, pad=1,
                     relu=True, out_dtype=jnp.bfloat16)
    c2 = conv2d_nchw(c1, params["bb_w2"], params["bb_b2"], stride=2, pad=1,
                     relu=True, out_dtype=jnp.bfloat16)
    feats = [c1, c2]

    # FeaturePyramidNetwork forward
    last_inner = conv2d_nchw(feats[-1], params["inner_w"][-1],
                             params["inner_b"][-1], out_dtype=jnp.bfloat16)
    results = [conv2d_nchw(last_inner, params["layer_w"][-1],
                           params["layer_b"][-1], pad=1, out_dtype=jnp.float32)]
    for idx in range(len(feats) - 2, -1, -1):
        top_up = _nearest_upsample2x(last_inner, feats[idx].shape[-2:])
        # fused in one kernel: inner 1x1 conv + bias + upsampled top-down add
        last_inner = conv2d_nchw(feats[idx], params["inner_w"][idx],
                                 params["inner_b"][idx], add=top_up,
                                 out_dtype=jnp.bfloat16)
        results.insert(0, conv2d_nchw(last_inner, params["layer_w"][idx],
                                      params["layer_b"][idx], pad=1,
                                      out_dtype=jnp.float32))

    # extra_blocks = LastLevelMaxPool(): max_pool2d(k=1, s=2) == strided slice
    results.append(results[-1][:, :, ::2, ::2])
    names = [str(i) for i in range(len(feats))] + ["pool"]

    # outputs are already PyTorch NCHW
    return OrderedDict(zip(names, results))


if __name__ == "__main__":
    key = jax.random.PRNGKey(0)
    pkey, xkey = jax.random.split(key)
    params = init_params(pkey)
    x = jax.random.normal(xkey, (2, 4, 16, 16), jnp.float32)  # NCHW like PyTorch

    fwd = jax.jit(backbone_with_fpn_forward)
    out = fwd(x, params)
    jax.block_until_ready(out)

    assert out["0"].shape == (2, OUT_CHANNELS, 8, 8)
    assert out["1"].shape == (2, OUT_CHANNELS, 4, 4)
    assert out["pool"].shape == (2, OUT_CHANNELS, 2, 2)
    print("KERNEL_OK")
</pallas_src>

<mosaic_0001>
module attributes {stable_mosaic.version = 11 : i64} {
  func.func @kernel(%arg0: i32, %arg1: memref<9x16x4xbf16, #tpu.memory_space<vmem>>, %arg2: memref<16x1xf32, #tpu.memory_space<vmem>>, %arg3: memref<1x4x4x90xbf16, #tpu.memory_space<vmem>>, %arg4: memref<1x16x72xbf16, #tpu.memory_space<vmem>>) attributes {dimension_semantics = [#tpu.dimension_semantics<parallel>], iteration_bounds = array<i64: 2>, scalar_prefetch = 0 : i64, scratch_operands = 0 : i64, tpu.core_type = #tpu.core_type<tc>, window_params = [{pipeline_mode = #tpu.pipeline_mode<synchronous>, transform_indices = @transform_0, window_bounds = array<i64: 9, 16, 4>}, {pipeline_mode = #tpu.pipeline_mode<synchronous>, transform_indices = @transform_1, window_bounds = array<i64: 16, 1>}, {transform_indices = @transform_2, window_bounds = array<i64: 1, 4, 4, 90>}, {transform_indices = @transform_3, window_bounds = array<i64: 1, 16, 72>}]} {
    %c0 = arith.constant 0 : index
    %c0_0 = arith.constant 0 : index
    %c0_1 = arith.constant 0 : index
    %c0_2 = arith.constant 0 : index
    %0 = vector.load %arg3[%c0, %c0_0, %c0_1, %c0_2] : memref<1x4x4x90xbf16, #tpu.memory_space<vmem>>, vector<1x1x4x72xbf16>
    %1 = vector.shape_cast %0 : vector<1x1x4x72xbf16> to vector<4x72xbf16>
    %c0_3 = arith.constant 0 : index
    %c0_4 = arith.constant 0 : index
    %c0_5 = arith.constant 0 : index
    %2 = vector.load %arg1[%c0_3, %c0_4, %c0_5] : memref<9x16x4xbf16, #tpu.memory_space<vmem>>, vector<1x16x4xbf16>
    %3 = vector.shape_cast %2 : vector<1x16x4xbf16> to vector<16x4xbf16>
    %cst = arith.constant dense<0.000000e+00> : vector<16x72xf32>
    %4 = tpu.matmul %3, %1, %cst {dimension_numbers = #tpu.dot_dimension_numbers<[1], [0], [0], [1], [0, 0, 1, 1], [], []>} : vector<16x4xbf16>, vector<4x72xbf16>, vector<16x72xf32> -> vector<16x72xf32>
    %c0_6 = arith.constant 0 : index
    %c1 = arith.constant 1 : index
    %c0_7 = arith.constant 0 : index
    %c0_8 = arith.constant 0 : index
    %5 = vector.load %arg3[%c0_6, %c1, %c0_7, %c0_8] : memref<1x4x4x90xbf16, #tpu.memory_space<vmem>>, vector<1x1x4x72xbf16>
    %6 = vector.shape_cast %5 : vector<1x1x4x72xbf16> to vector<4x72xbf16>
    %c1_9 = arith.constant 1 : index
    %c0_10 = arith.constant 0 : index
    %c0_11 = arith.constant 0 : index
    %7 = vector.load %arg1[%c1_9, %c0_10, %c0_11] : memref<9x16x4xbf16, #tpu.memory_space<vmem>>, vector<1x16x4xbf16>
    %8 = vector.shape_cast %7 : vector<1x16x4xbf16> to vector<16x4xbf16>
    %cst_12 = arith.constant dense<0.000000e+00> : vector<16x72xf32>
    %9 = tpu.matmul %8, %6, %cst_12 {dimension_numbers = #tpu.dot_dimension_numbers<[1], [0], [0], [1], [0, 0, 1, 1], [], []>} : vector<16x4xbf16>, vector<4x72xbf16>, vector<16x72xf32> -> vector<16x72xf32>
    %10 = arith.addf %4, %9 : vector<16x72xf32>
    %c0_13 = arith.constant 0 : index
    %c0_14 = arith.constant 0 : index
    %c0_15 = arith.constant 0 : index
    %c1_16 = arith.constant 1 : index
    %11 = vector.load %arg3[%c0_13, %c0_14, %c0_15, %c1_16] : memref<1x4x4x90xbf16, #tpu.memory_space<vmem>>, vector<1x1x4x72xbf16>
    %12 = vector.shape_cast %11 : vector<1x1x4x72xbf16> to vector<4x72xbf16>
    %c2 = arith.constant 2 : index
    %c0_17 = arith.constant 0 : index
    %c0_18 = arith.constant 0 : index
    %13 = vector.load %arg1[%c2, %c0_17, %c0_18] : memref<9x16x4xbf16, #tpu.memory_space<vmem>>, vector<1x16x4xbf16>
    %14 = vector.shape_cast %13 : vector<1x16x4xbf16> to vector<16x4xbf16>
    %cst_19 = arith.constant dense<0.000000e+00> : vector<16x72xf32>
    %15 = tpu.matmul %14, %12, %cst_19 {dimension_numbers = #tpu.dot_dimension_numbers<[1], [0], [0], [1], [0, 0, 1, 1], [], []>} : vector<16x4xbf16>, vector<4x72xbf16>, vector<16x72xf32> -> vector<16x72xf32>
    %16 = arith.addf %10, %15 : vector<16x72xf32>
    %c0_20 = arith.constant 0 : index
    %c2_21 = arith.constant 2 : index
    %c0_22 = arith.constant 0 : index
    %c0_23 = arith.constant 0 : index
    %17 = vector.load %arg3[%c0_20, %c2_21, %c0_22, %c0_23] : memref<1x4x4x90xbf16, #tpu.memory_space<vmem>>, vector<1x1x4x72xbf16>
    %18 = vector.shape_cast %17 : vector<1x1x4x72xbf16> to vector<4x72xbf16>
    %c3 = arith.constant 3 : index
    %c0_24 = arith.constant 0 : index
    %c0_25 = arith.constant 0 : index
    %19 = vector.load %arg1[%c3, %c0_24, %c0_25] : memref<9x16x4xbf16, #tpu.memory_space<vmem>>, vector<1x16x4xbf16>
    %20 = vector.shape_cast %19 : vector<1x16x4xbf16> to vector<16x4xbf16>
    %cst_26 = arith.constant dense<0.000000e+00> : vector<16x72xf32>
    %21 = tpu.matmul %20, %18, %cst_26 {dimension_numbers = #tpu.dot_dimension_numbers<[1], [0], [0], [1], [0, 0, 1, 1], [], []>} : vector<16x4xbf16>, vector<4x72xbf16>, vector<16x72xf32> -> vector<16x72xf32>
    %22 = arith.addf %16, %21 : vector<16x72xf32>
    %c0_27 = arith.constant 0 : index
    %c3_28 = arith.constant 3 : index
    %c0_29 = arith.constant 0 : index
    %c0_30 = arith.constant 0 : index
    %23 = vector.load %arg3[%c0_27, %c3_28, %c0_29, %c0_30] : memref<1x4x4x90xbf16, #tpu.memory_space<vmem>>, vector<1x1x4x72xbf16>
    %24 = vector.shape_cast %23 : vector<1x1x4x72xbf16> to vector<4x72xbf16>
    %c4 = arith.constant 4 : index
    %c0_31 = arith.constant 0 : index
    %c0_32 = arith.constant 0 : index
    %25 = vector.load %arg1[%c4, %c0_31, %c0_32] : memref<9x16x4xbf16, #tpu.memory_space<vmem>>, vector<1x16x4xbf16>
    %26 = vector.shape_cast %25 : vector<1x16x4xbf16> to vector<16x4xbf16>
    %cst_33 = arith.constant dense<0.000000e+00> : vector<16x72xf32>
    %27 = tpu.matmul %26, %24, %cst_33 {dimension_numbers = #tpu.dot_dimension_numbers<[1], [0], [0], [1], [0, 0, 1, 1], [], []>} : vector<16x4xbf16>, vector<4x72xbf16>, vector<16x72xf32> -> vector<16x72xf32>
    %28 = arith.addf %22, %27 : vector<16x72xf32>
    %c0_34 = arith.constant 0 : index
    %c2_35 = arith.constant 2 : index
    %c0_36 = arith.constant 0 : index
    %c1_37 = arith.constant 1 : index
    %29 = vector.load %arg3[%c0_34, %c2_35, %c0_36, %c1_37] : memref<1x4x4x90xbf16, #tpu.memory_space<vmem>>, vector<1x1x4x72xbf16>
    %30 = vector.shape_cast %29 : vector<1x1x4x72xbf16> to vector<4x72xbf16>
    %c5 = arith.constant 5 : index
    %c0_38 = arith.constant 0 : index
    %c0_39 = arith.constant 0 : index
    %31 = vector.load %arg1[%c5, %c0_38, %c0_39] : memref<9x16x4xbf16, #tpu.memory_space<vmem>>, vector<1x16x4xbf16>
    %32 = vector.shape_cast %31 : vector<1x16x4xbf16> to vector<16x4xbf16>
    %cst_40 = arith.constant dense<0.000000e+00> : vector<16x72xf32>
    %33 = tpu.matmul %32, %30, %cst_40 {dimension_numbers = #tpu.dot_dimension_numbers<[1], [0], [0], [1], [0, 0, 1, 1], [], []>} : vector<16x4xbf16>, vector<4x72xbf16>, vector<16x72xf32> -> vector<16x72xf32>
    %34 = arith.addf %28, %33 : vector<16x72xf32>
    %c0_41 = arith.constant 0 : index
    %c0_42 = arith.constant 0 : index
    %c0_43 = arith.constant 0 : index
    %c9 = arith.constant 9 : index
    %35 = vector.load %arg3[%c0_41, %c0_42, %c0_43, %c9] : memref<1x4x4x90xbf16, #tpu.memory_space<vmem>>, vector<1x1x4x72xbf16>
    %36 = vector.shape_cast %35 : vector<1x1x4x72xbf16> to vector<4x72xbf16>
    %c6 = arith.constant 6 : index
    %c0_44 = arith.constant 0 : index
    %c0_45 = arith.constant 0 : index
    %37 = vector.load %arg1[%c6, %c0_44, %c0_45] : memref<9x16x4xbf16, #tpu.memory_space<vmem>>, vector<1x16x4xbf16>
    %38 = vector.shape_cast %37 : vector<1x16x4xbf16> to vector<16x4xbf16>
    %cst_46 = arith.constant dense<0.000000e+00> : vector<16x72xf32>
    %39 = tpu.matmul %38, %36, %cst_46 {dimension_numbers = #tpu.dot_dimension_numbers<[1], [0], [0], [1], [0, 0, 1, 1], [], []>} : vector<16x4xbf16>, vector<4x72xbf16>, vector<16x72xf32> -> vector<16x72xf32>
    %40 = arith.addf %34, %39 : vector<16x72xf32>
    %c0_47 = arith.constant 0 : index
    %c1_48 = arith.constant 1 : index
    %c0_49 = arith.constant 0 : index
    %c9_50 = arith.constant 9 : index
    %41 = vector.load %arg3[%c0_47, %c1_48, %c0_49, %c9_50] : memref<1x4x4x90xbf16, #tpu.memory_space<vmem>>, vector<1x1x4x72xbf16>
    %42 = vector.shape_cast %41 : vector<1x1x4x72xbf16> to vector<4x72xbf16>
    %c7 = arith.constant 7 : index
    %c0_51 = arith.constant 0 : index
    %c0_52 = arith.constant 0 : index
    %43 = vector.load %arg1[%c7, %c0_51, %c0_52] : memref<9x16x4xbf16, #tpu.memory_space<vmem>>, vector<1x16x4xbf16>
    %44 = vector.shape_cast %43 : vector<1x16x4xbf16> to vector<16x4xbf16>
    %cst_53 = arith.constant dense<0.000000e+00> : vector<16x72xf32>
    %45 = tpu.matmul %44, %42, %cst_53 {dimension_numbers = #tpu.dot_dimension_numbers<[1], [0], [0], [1], [0, 0, 1, 1], [], []>} : vector<16x4xbf16>, vector<4x72xbf16>, vector<16x72xf32> -> vector<16x72xf32>
    %46 = arith.addf %40, %45 : vector<16x72xf32>
    %c0_54 = arith.constant 0 : index
    %c0_55 = arith.constant 0 : index
    %c0_56 = arith.constant 0 : index
    %c10 = arith.constant 10 : index
    %47 = vector.load %arg3[%c0_54, %c0_55, %c0_56, %c10] : memref<1x4x4x90xbf16, #tpu.memory_space<vmem>>, vector<1x1x4x72xbf16>
    %48 = vector.shape_cast %47 : vector<1x1x4x72xbf16> to vector<4x72xbf16>
    %c8 = arith.constant 8 : index
    %c0_57 = arith.constant 0 : index
    %c0_58 = arith.constant 0 : index
    %49 = vector.load %arg1[%c8, %c0_57, %c0_58] : memref<9x16x4xbf16, #tpu.memory_space<vmem>>, vector<1x16x4xbf16>
    %50 = vector.shape_cast %49 : vector<1x16x4xbf16> to vector<16x4xbf16>
    %cst_59 = arith.constant dense<0.000000e+00> : vector<16x72xf32>
    %51 = tpu.matmul %50, %48, %cst_59 {dimension_numbers = #tpu.dot_dimension_numbers<[1], [0], [0], [1], [0, 0, 1, 1], [], []>} : vector<16x4xbf16>, vector<4x72xbf16>, vector<16x72xf32> -> vector<16x72xf32>
    %52 = arith.addf %46, %51 : vector<16x72xf32>
    %c0_60 = arith.constant 0 : index
    %c0_61 = arith.constant 0 : index
    %53 = vector.load %arg2[%c0_60, %c0_61] : memref<16x1xf32, #tpu.memory_space<vmem>>, vector<16x1xf32>
    %54 = vector.broadcast %53 : vector<16x1xf32> to vector<16x72xf32>
    %55 = arith.addf %52, %54 : vector<16x72xf32>
    %cst_62 = arith.constant 0.000000e+00 : f32
    %56 = vector.broadcast %cst_62 : f32 to vector<16x72xf32>
    %57 = arith.maximumf %55, %56 : vector<16x72xf32>
    %58 = arith.truncf %57 : vector<16x72xf32> to vector<16x72xbf16>
    %c0_63 = arith.constant 0 : index
    %c0_64 = arith.constant 0 : index
    %c0_65 = arith.constant 0 : index
    %59 = vector.load %arg4[%c0_63, %c0_64, %c0_65] : memref<1x16x72xbf16, #tpu.memory_space<vmem>>, vector<1x16x72xbf16>
    %60 = vector.shape_cast %59 : vector<1x16x72xbf16> to vector<16x72xbf16>
    %61 = vector.shape_cast %58 : vector<16x72xbf16> to vector<1x16x72xbf16>
    tpu.vector_store %arg4[%c0_63, %c0_64, %c0_65], %61 {strides = array<i32>} : memref<1x16x72xbf16, #tpu.memory_space<vmem>>, vector<1x16x72xbf16>,
    return
  }
  func.func @transform_0(%arg0: i32) -> (i32, i32, i32) {
    %c0_i32 = arith.constant 0 : i32
    %c0_i32_0 = arith.constant 0 : i32
    %c0_i32_1 = arith.constant 0 : i32
    %c0_i32_2 = arith.constant 0 : i32
    return %c0_i32, %c0_i32_0, %c0_i32_1 : i32, i32, i32
  }
  func.func @transform_1(%arg0: i32) -> (i32, i32) {
    %c0_i32 = arith.constant 0 : i32
    %c0_i32_0 = arith.constant 0 : i32
    %c0_i32_1 = arith.constant 0 : i32
    return %c0_i32, %c0_i32_0 : i32, i32
  }
  func.func @transform_2(%arg0: i32) -> (i32, i32, i32, i32) {
    %c0_i32 = arith.constant 0 : i32
    %c0_i32_0 = arith.constant 0 : i32
    %c0_i32_1 = arith.constant 0 : i32
    %c0_i32_2 = arith.constant 0 : i32
    return %arg0, %c0_i32, %c0_i32_0, %c0_i32_1 : i32, i32, i32, i32
  }
  func.func @transform_3(%arg0: i32) -> (i32, i32, i32) {
    %c0_i32 = arith.constant 0 : i32
    %c0_i32_0 = arith.constant 0 : i32
    %c0_i32_1 = arith.constant 0 : i32
    return %arg0, %c0_i32, %c0_i32_0 : i32, i32, i32
  }
}

module attributes {stable_mosaic.version = 11 : i64} {
  func.func @kernel(%arg0: i32, %arg1: memref<9x32x16xbf16, #tpu.memory_space<vmem>>, %arg2: memref<32x1xf32, #tpu.memory_space<vmem>>, %arg3: memref<1x4x16x30xbf16, #tpu.memory_space<vmem>>, %arg4: memref<1x32x20xbf16, #tpu.memory_space<vmem>>) attributes {dimension_semantics = [#tpu.dimension_semantics<parallel>], iteration_bounds = array<i64: 2>, scalar_prefetch = 0 : i64, scratch_operands = 0 : i64, tpu.core_type = #tpu.core_type<tc>, window_params = [{pipeline_mode = #tpu.pipeline_mode<synchronous>, transform_indices = @transform_0, window_bounds = array<i64: 9, 32, 16>}, {pipeline_mode = #tpu.pipeline_mode<synchronous>, transform_indices = @transform_1, window_bounds = array<i64: 32, 1>}, {transform_indices = @transform_2, window_bounds = array<i64: 1, 4, 16, 30>}, {transform_indices = @transform_3, window_bounds = array<i64: 1, 32, 20>}]} {
    %c0 = arith.constant 0 : index
    %c0_0 = arith.constant 0 : index
    %c0_1 = arith.constant 0 : index
    %c0_2 = arith.constant 0 : index
    %0 = vector.load %arg3[%c0, %c0_0, %c0_1, %c0_2] : memref<1x4x16x30xbf16, #tpu.memory_space<vmem>>, vector<1x1x16x20xbf16>
    %1 = vector.shape_cast %0 : vector<1x1x16x20xbf16> to vector<16x20xbf16>
    %c0_3 = arith.constant 0 : index
    %c0_4 = arith.constant 0 : index
    %c0_5 = arith.constant 0 : index
    %2 = vector.load %arg1[%c0_3, %c0_4, %c0_5] : memref<9x32x16xbf16, #tpu.memory_space<vmem>>, vector<1x32x16xbf16>
    %3 = vector.shape_cast %2 : vector<1x32x16xbf16> to vector<32x16xbf16>
    %cst = arith.constant dense<0.000000e+00> : vector<32x20xf32>
    %4 = tpu.matmul %3, %1, %cst {dimension_numbers = #tpu.dot_dimension_numbers<[1], [0], [0], [1], [0, 0, 1, 1], [], []>} : vector<32x16xbf16>, vector<16x20xbf16>, vector<32x20xf32> -> vector<32x20xf32>
    %c0_6 = arith.constant 0 : index
    %c1 = arith.constant 1 : index
    %c0_7 = arith.constant 0 : index
    %c0_8 = arith.constant 0 : index
    %5 = vector.load %arg3[%c0_6, %c1, %c0_7, %c0_8] : memref<1x4x16x30xbf16, #tpu.memory_space<vmem>>, vector<1x1x16x20xbf16>
    %6 = vector.shape_cast %5 : vector<1x1x16x20xbf16> to vector<16x20xbf16>
    %c1_9 = arith.constant 1 : index
    %c0_10 = arith.constant 0 : index
    %c0_11 = arith.constant 0 : index
    %7 = vector.load %arg1[%c1_9, %c0_10, %c0_11] : memref<9x32x16xbf16, #tpu.memory_space<vmem>>, vector<1x32x16xbf16>
    %8 = vector.shape_cast %7 : vector<1x32x16xbf16> to vector<32x16xbf16>
    %cst_12 = arith.constant dense<0.000000e+00> : vector<32x20xf32>
    %9 = tpu.matmul %8, %6, %cst_12 {dimension_numbers = #tpu.dot_dimension_numbers<[1], [0], [0], [1], [0, 0, 1, 1], [], []>} : vector<32x16xbf16>, vector<16x20xbf16>, vector<32x20xf32> -> vector<32x20xf32>
    %10 = arith.addf %4, %9 : vector<32x20xf32>
    %c0_13 = arith.constant 0 : index
    %c0_14 = arith.constant 0 : index
    %c0_15 = arith.constant 0 : index
    %c1_16 = arith.constant 1 : index
    %11 = vector.load %arg3[%c0_13, %c0_14, %c0_15, %c1_16] : memref<1x4x16x30xbf16, #tpu.memory_space<vmem>>, vector<1x1x16x20xbf16>
    %12 = vector.shape_cast %11 : vector<1x1x16x20xbf16> to vector<16x20xbf16>
    %c2 = arith.constant 2 : index
    %c0_17 = arith.constant 0 : index
    %c0_18 = arith.constant 0 : index
    %13 = vector.load %arg1[%c2, %c0_17, %c0_18] : memref<9x32x16xbf16, #tpu.memory_space<vmem>>, vector<1x32x16xbf16>
    %14 = vector.shape_cast %13 : vector<1x32x16xbf16> to vector<32x16xbf16>
    %cst_19 = arith.constant dense<0.000000e+00> : vector<32x20xf32>
    %15 = tpu.matmul %14, %12, %cst_19 {dimension_numbers = #tpu.dot_dimension_numbers<[1], [0], [0], [1], [0, 0, 1, 1], [], []>} : vector<32x16xbf16>, vector<16x20xbf16>, vector<32x20xf32> -> vector<32x20xf32>
    %16 = arith.addf %10, %15 : vector<32x20xf32>
    %c0_20 = arith.constant 0 : index
    %c2_21 = arith.constant 2 : index
    %c0_22 = arith.constant 0 : index
    %c0_23 = arith.constant 0 : index
    %17 = vector.load %arg3[%c0_20, %c2_21, %c0_22, %c0_23] : memref<1x4x16x30xbf16, #tpu.memory_space<vmem>>, vector<1x1x16x20xbf16>
    %18 = vector.shape_cast %17 : vector<1x1x16x20xbf16> to vector<16x20xbf16>
    %c3 = arith.constant 3 : index
    %c0_24 = arith.constant 0 : index
    %c0_25 = arith.constant 0 : index
    %19 = vector.load %arg1[%c3, %c0_24, %c0_25] : memref<9x32x16xbf16, #tpu.memory_space<vmem>>, vector<1x32x16xbf16>
    %20 = vector.shape_cast %19 : vector<1x32x16xbf16> to vector<32x16xbf16>
    %cst_26 = arith.constant dense<0.000000e+00> : vector<32x20xf32>
    %21 = tpu.matmul %20, %18, %cst_26 {dimension_numbers = #tpu.dot_dimension_numbers<[1], [0], [0], [1], [0, 0, 1, 1], [], []>} : vector<32x16xbf16>, vector<16x20xbf16>, vector<32x20xf32> -> vector<32x20xf32>
    %22 = arith.addf %16, %21 : vector<32x20xf32>
    %c0_27 = arith.constant 0 : index
    %c3_28 = arith.constant 3 : index
    %c0_29 = arith.constant 0 : index
    %c0_30 = arith.constant 0 : index
    %23 = vector.load %arg3[%c0_27, %c3_28, %c0_29, %c0_30] : memref<1x4x16x30xbf16, #tpu.memory_space<vmem>>, vector<1x1x16x20xbf16>
    %24 = vector.shape_cast %23 : vector<1x1x16x20xbf16> to vector<16x20xbf16>
    %c4 = arith.constant 4 : index
    %c0_31 = arith.constant 0 : index
    %c0_32 = arith.constant 0 : index
    %25 = vector.load %arg1[%c4, %c0_31, %c0_32] : memref<9x32x16xbf16, #tpu.memory_space<vmem>>, vector<1x32x16xbf16>
    %26 = vector.shape_cast %25 : vector<1x32x16xbf16> to vector<32x16xbf16>
    %cst_33 = arith.constant dense<0.000000e+00> : vector<32x20xf32>
    %27 = tpu.matmul %26, %24, %cst_33 {dimension_numbers = #tpu.dot_dimension_numbers<[1], [0], [0], [1], [0, 0, 1, 1], [], []>} : vector<32x16xbf16>, vector<16x20xbf16>, vector<32x20xf32> -> vector<32x20xf32>
    %28 = arith.addf %22, %27 : vector<32x20xf32>
    %c0_34 = arith.constant 0 : index
    %c2_35 = arith.constant 2 : index
    %c0_36 = arith.constant 0 : index
    %c1_37 = arith.constant 1 : index
    %29 = vector.load %arg3[%c0_34, %c2_35, %c0_36, %c1_37] : memref<1x4x16x30xbf16, #tpu.memory_space<vmem>>, vector<1x1x16x20xbf16>
    %30 = vector.shape_cast %29 : vector<1x1x16x20xbf16> to vector<16x20xbf16>
    %c5 = arith.constant 5 : index
    %c0_38 = arith.constant 0 : index
    %c0_39 = arith.constant 0 : index
    %31 = vector.load %arg1[%c5, %c0_38, %c0_39] : memref<9x32x16xbf16, #tpu.memory_space<vmem>>, vector<1x32x16xbf16>
    %32 = vector.shape_cast %31 : vector<1x32x16xbf16> to vector<32x16xbf16>
    %cst_40 = arith.constant dense<0.000000e+00> : vector<32x20xf32>
    %33 = tpu.matmul %32, %30, %cst_40 {dimension_numbers = #tpu.dot_dimension_numbers<[1], [0], [0], [1], [0, 0, 1, 1], [], []>} : vector<32x16xbf16>, vector<16x20xbf16>, vector<32x20xf32> -> vector<32x20xf32>
    %34 = arith.addf %28, %33 : vector<32x20xf32>
    %c0_41 = arith.constant 0 : index
    %c0_42 = arith.constant 0 : index
    %c0_43 = arith.constant 0 : index
    %c5_44 = arith.constant 5 : index
    %35 = vector.load %arg3[%c0_41, %c0_42, %c0_43, %c5_44] : memref<1x4x16x30xbf16, #tpu.memory_space<vmem>>, vector<1x1x16x20xbf16>
    %36 = vector.shape_cast %35 : vector<1x1x16x20xbf16> to vector<16x20xbf16>
    %c6 = arith.constant 6 : index
    %c0_45 = arith.constant 0 : index
    %c0_46 = arith.constant 0 : index
    %37 = vector.load %arg1[%c6, %c0_45, %c0_46] : memref<9x32x16xbf16, #tpu.memory_space<vmem>>, vector<1x32x16xbf16>
    %38 = vector.shape_cast %37 : vector<1x32x16xbf16> to vector<32x16xbf16>
    %cst_47 = arith.constant dense<0.000000e+00> : vector<32x20xf32>
    %39 = tpu.matmul %38, %36, %cst_47 {dimension_numbers = #tpu.dot_dimension_numbers<[1], [0], [0], [1], [0, 0, 1, 1], [], []>} : vector<32x16xbf16>, vector<16x20xbf16>, vector<32x20xf32> -> vector<32x20xf32>
    %40 = arith.addf %34, %39 : vector<32x20xf32>
    %c0_48 = arith.constant 0 : index
    %c1_49 = arith.constant 1 : index
    %c0_50 = arith.constant 0 : index
    %c5_51 = arith.constant 5 : index
    %41 = vector.load %arg3[%c0_48, %c1_49, %c0_50, %c5_51] : memref<1x4x16x30xbf16, #tpu.memory_space<vmem>>, vector<1x1x16x20xbf16>
    %42 = vector.shape_cast %41 : vector<1x1x16x20xbf16> to vector<16x20xbf16>
    %c7 = arith.constant 7 : index
    %c0_52 = arith.constant 0 : index
    %c0_53 = arith.constant 0 : index
    %43 = vector.load %arg1[%c7, %c0_52, %c0_53] : memref<9x32x16xbf16, #tpu.memory_space<vmem>>, vector<1x32x16xbf16>
    %44 = vector.shape_cast %43 : vector<1x32x16xbf16> to vector<32x16xbf16>
    %cst_54 = arith.constant dense<0.000000e+00> : vector<32x20xf32>
    %45 = tpu.matmul %44, %42, %cst_54 {dimension_numbers = #tpu.dot_dimension_numbers<[1], [0], [0], [1], [0, 0, 1, 1], [], []>} : vector<32x16xbf16>, vector<16x20xbf16>, vector<32x20xf32> -> vector<32x20xf32>
    %46 = arith.addf %40, %45 : vector<32x20xf32>
    %c0_55 = arith.constant 0 : index
    %c0_56 = arith.constant 0 : index
    %c0_57 = arith.constant 0 : index
    %c6_58 = arith.constant 6 : index
    %47 = vector.load %arg3[%c0_55, %c0_56, %c0_57, %c6_58] : memref<1x4x16x30xbf16, #tpu.memory_space<vmem>>, vector<1x1x16x20xbf16>
    %48 = vector.shape_cast %47 : vector<1x1x16x20xbf16> to vector<16x20xbf16>
    %c8 = arith.constant 8 : index
    %c0_59 = arith.constant 0 : index
    %c0_60 = arith.constant 0 : index
    %49 = vector.load %arg1[%c8, %c0_59, %c0_60] : memref<9x32x16xbf16, #tpu.memory_space<vmem>>, vector<1x32x16xbf16>
    %50 = vector.shape_cast %49 : vector<1x32x16xbf16> to vector<32x16xbf16>
    %cst_61 = arith.constant dense<0.000000e+00> : vector<32x20xf32>
    %51 = tpu.matmul %50, %48, %cst_61 {dimension_numbers = #tpu.dot_dimension_numbers<[1], [0], [0], [1], [0, 0, 1, 1], [], []>} : vector<32x16xbf16>, vector<16x20xbf16>, vector<32x20xf32> -> vector<32x20xf32>
    %52 = arith.addf %46, %51 : vector<32x20xf32>
    %c0_62 = arith.constant 0 : index
    %c0_63 = arith.constant 0 : index
    %53 = vector.load %arg2[%c0_62, %c0_63] : memref<32x1xf32, #tpu.memory_space<vmem>>, vector<32x1xf32>
    %54 = vector.broadcast %53 : vector<32x1xf32> to vector<32x20xf32>
    %55 = arith.addf %52, %54 : vector<32x20xf32>
    %cst_64 = arith.constant 0.000000e+00 : f32
    %56 = vector.broadcast %cst_64 : f32 to vector<32x20xf32>
    %57 = arith.maximumf %55, %56 : vector<32x20xf32>
    %58 = arith.truncf %57 : vector<32x20xf32> to vector<32x20xbf16>
    %c0_65 = arith.constant 0 : index
    %c0_66 = arith.constant 0 : index
    %c0_67 = arith.constant 0 : index
    %59 = vector.load %arg4[%c0_65, %c0_66, %c0_67] : memref<1x32x20xbf16, #tpu.memory_space<vmem>>, vector<1x32x20xbf16>
    %60 = vector.shape_cast %59 : vector<1x32x20xbf16> to vector<32x20xbf16>
    %61 = vector.shape_cast %58 : vector<32x20xbf16> to vector<1x32x20xbf16>
    tpu.vector_store %arg4[%c0_65, %c0_66, %c0_67], %61 {strides = array<i32>} : memref<1x32x20xbf16, #tpu.memory_space<vmem>>, vector<1x32x20xbf16>,
    return
  }
  func.func @transform_0(%arg0: i32) -> (i32, i32, i32) {
    %c0_i32 = arith.constant 0 : i32
    %c0_i32_0 = arith.constant 0 : i32
    %c0_i32_1 = arith.constant 0 : i32
    %c0_i32_2 = arith.constant 0 : i32
    return %c0_i32, %c0_i32_0, %c0_i32_1 : i32, i32, i32
  }
  func.func @transform_1(%arg0: i32) -> (i32, i32) {
    %c0_i32 = arith.constant 0 : i32
    %c0_i32_0 = arith.constant 0 : i32
    %c0_i32_1 = arith.constant 0 : i32
    return %c0_i32, %c0_i32_0 : i32, i32
  }
  func.func @transform_2(%arg0: i32) -> (i32, i32, i32, i32) {
    %c0_i32 = arith.constant 0 : i32
    %c0_i32_0 = arith.constant 0 : i32
    %c0_i32_1 = arith.constant 0 : i32
    %c0_i32_2 = arith.constant 0 : i32
    return %arg0, %c0_i32, %c0_i32_0, %c0_i32_1 : i32, i32, i32, i32
  }
  func.func @transform_3(%arg0: i32) -> (i32, i32, i32) {
    %c0_i32 = arith.constant 0 : i32
    %c0_i32_0 = arith.constant 0 : i32
    %c0_i32_1 = arith.constant 0 : i32
    return %arg0, %c0_i32, %c0_i32_0 : i32, i32, i32
  }
}

module attributes {stable_mosaic.version = 11 : i64} {
  func.func @kernel(%arg0: i32, %arg1: memref<1x8x32xbf16, #tpu.memory_space<vmem>>, %arg2: memref<8x1xf32, #tpu.memory_space<vmem>>, %arg3: memref<1x1x32x16xbf16, #tpu.memory_space<vmem>>, %arg4: memref<1x8x16xbf16, #tpu.memory_space<vmem>>) attributes {dimension_semantics = [#tpu.dimension_semantics<parallel>], iteration_bounds = array<i64: 2>, scalar_prefetch = 0 : i64, scratch_operands = 0 : i64, tpu.core_type = #tpu.core_type<tc>, window_params = [{pipeline_mode = #tpu.pipeline_mode<synchronous>, transform_indices = @transform_0, window_bounds = array<i64: 1, 8, 32>}, {pipeline_mode = #tpu.pipeline_mode<synchronous>, transform_indices = @transform_1, window_bounds = array<i64: 8, 1>}, {transform_indices = @transform_2, window_bounds = array<i64: 1, 1, 32, 16>}, {transform_indices = @transform_3, window_bounds = array<i64: 1, 8, 16>}]} {
    %c0 = arith.constant 0 : index
    %c0_0 = arith.constant 0 : index
    %c0_1 = arith.constant 0 : index
    %c0_2 = arith.constant 0 : index
    %0 = vector.load %arg3[%c0, %c0_0, %c0_1, %c0_2] : memref<1x1x32x16xbf16, #tpu.memory_space<vmem>>, vector<1x1x32x16xbf16>
    %1 = vector.shape_cast %0 : vector<1x1x32x16xbf16> to vector<32x16xbf16>
    %c0_3 = arith.constant 0 : index
    %c0_4 = arith.constant 0 : index
    %c0_5 = arith.constant 0 : index
    %2 = vector.load %arg1[%c0_3, %c0_4, %c0_5] : memref<1x8x32xbf16, #tpu.memory_space<vmem>>, vector<1x8x32xbf16>
    %3 = vector.shape_cast %2 : vector<1x8x32xbf16> to vector<8x32xbf16>
    %cst = arith.constant dense<0.000000e+00> : vector<8x16xf32>
    %4 = tpu.matmul %3, %1, %cst {dimension_numbers = #tpu.dot_dimension_numbers<[1], [0], [0], [1], [0, 0, 1, 1], [], []>} : vector<8x32xbf16>, vector<32x16xbf16>, vector<8x16xf32> -> vector<8x16xf32>
    %c0_6 = arith.constant 0 : index
    %c0_7 = arith.constant 0 : index
    %5 = vector.load %arg2[%c0_6, %c0_7] : memref<8x1xf32, #tpu.memory_space<vmem>>, vector<8x1xf32>
    %6 = vector.broadcast %5 : vector<8x1xf32> to vector<8x16xf32>
    %7 = arith.addf %4, %6 : vector<8x16xf32>
    %8 = arith.truncf %7 : vector<8x16xf32> to vector<8x16xbf16>
    %c0_8 = arith.constant 0 : index
    %c0_9 = arith.constant 0 : index
    %c0_10 = arith.constant 0 : index
    %9 = vector.load %arg4[%c0_8, %c0_9, %c0_10] : memref<1x8x16xbf16, #tpu.memory_space<vmem>>, vector<1x8x16xbf16>
    %10 = vector.shape_cast %9 : vector<1x8x16xbf16> to vector<8x16xbf16>
    %11 = vector.shape_cast %8 : vector<8x16xbf16> to vector<1x8x16xbf16>
    tpu.vector_store %arg4[%c0_8, %c0_9, %c0_10], %11 {strides = array<i32>} : memref<1x8x16xbf16, #tpu.memory_space<vmem>>, vector<1x8x16xbf16>,
    return
  }
  func.func @transform_0(%arg0: i32) -> (i32, i32, i32) {
    %c0_i32 = arith.constant 0 : i32
    %c0_i32_0 = arith.constant 0 : i32
    %c0_i32_1 = arith.constant 0 : i32
    %c0_i32_2 = arith.constant 0 : i32
    return %c0_i32, %c0_i32_0, %c0_i32_1 : i32, i32, i32
  }
  func.func @transform_1(%arg0: i32) -> (i32, i32) {
    %c0_i32 = arith.constant 0 : i32
    %c0_i32_0 = arith.constant 0 : i32
    %c0_i32_1 = arith.constant 0 : i32
    return %c0_i32, %c0_i32_0 : i32, i32
  }
  func.func @transform_2(%arg0: i32) -> (i32, i32, i32, i32) {
    %c0_i32 = arith.constant 0 : i32
    %c0_i32_0 = arith.constant 0 : i32
    %c0_i32_1 = arith.constant 0 : i32
    %c0_i32_2 = arith.constant 0 : i32
    return %arg0, %c0_i32, %c0_i32_0, %c0_i32_1 : i32, i32, i32, i32
  }
  func.func @transform_3(%arg0: i32) -> (i32, i32, i32) {
    %c0_i32 = arith.constant 0 : i32
    %c0_i32_0 = arith.constant 0 : i32
    %c0_i32_1 = arith.constant 0 : i32
    return %arg0, %c0_i32, %c0_i32_0 : i32, i32, i32
  }
}

module attributes {stable_mosaic.version = 11 : i64} {
  func.func @kernel(%arg0: i32, %arg1: memref<1x8x16xbf16, #tpu.memory_space<vmem>>, %arg2: memref<8x1xf32, #tpu.memory_space<vmem>>, %arg3: memref<1x1x16x64xbf16, #tpu.memory_space<vmem>>, %arg4: memref<1x8x64xbf16, #tpu.memory_space<vmem>>, %arg5: memref<1x8x64xbf16, #tpu.memory_space<vmem>>) attributes {dimension_semantics = [#tpu.dimension_semantics<parallel>], iteration_bounds = array<i64: 2>, scalar_prefetch = 0 : i64, scratch_operands = 0 : i64, tpu.core_type = #tpu.core_type<tc>, window_params = [{pipeline_mode = #tpu.pipeline_mode<synchronous>, transform_indices = @transform_0, window_bounds = array<i64: 1, 8, 16>}, {pipeline_mode = #tpu.pipeline_mode<synchronous>, transform_indices = @transform_1, window_bounds = array<i64: 8, 1>}, {transform_indices = @transform_2, window_bounds = array<i64: 1, 1, 16, 64>}, {transform_indices = @transform_3, window_bounds = array<i64: 1, 8, 64>}, {transform_indices = @transform_4, window_bounds = array<i64: 1, 8, 64>}]} {
    %c0 = arith.constant 0 : index
    %c0_0 = arith.constant 0 : index
    %c0_1 = arith.constant 0 : index
    %c0_2 = arith.constant 0 : index
    %0 = vector.load %arg3[%c0, %c0_0, %c0_1, %c0_2] : memref<1x1x16x64xbf16, #tpu.memory_space<vmem>>, vector<1x1x16x64xbf16>
    %1 = vector.shape_cast %0 : vector<1x1x16x64xbf16> to vector<16x64xbf16>
    %c0_3 = arith.constant 0 : index
    %c0_4 = arith.constant 0 : index
    %c0_5 = arith.constant 0 : index
    %2 = vector.load %arg1[%c0_3, %c0_4, %c0_5] : memref<1x8x16xbf16, #tpu.memory_space<vmem>>, vector<1x8x16xbf16>
    %3 = vector.shape_cast %2 : vector<1x8x16xbf16> to vector<8x16xbf16>
    %cst = arith.constant dense<0.000000e+00> : vector<8x64xf32>
    %4 = tpu.matmul %3, %1, %cst {dimension_numbers = #tpu.dot_dimension_numbers<[1], [0], [0], [1], [0, 0, 1, 1], [], []>} : vector<8x16xbf16>, vector<16x64xbf16>, vector<8x64xf32> -> vector<8x64xf32>
    %c0_6 = arith.constant 0 : index
    %c0_7 = arith.constant 0 : index
    %c0_8 = arith.constant 0 : index
    %5 = vector.load %arg4[%c0_6, %c0_7, %c0_8] : memref<1x8x64xbf16, #tpu.memory_space<vmem>>, vector<1x8x64xbf16>
    %6 = vector.shape_cast %5 : vector<1x8x64xbf16> to vector<8x64xbf16>
    %7 = arith.extf %6 : vector<8x64xbf16> to vector<8x64xf32>
    %c0_9 = arith.constant 0 : index
    %c0_10 = arith.constant 0 : index
    %8 = vector.load %arg2[%c0_9, %c0_10] : memref<8x1xf32, #tpu.memory_space<vmem>>, vector<8x1xf32>
    %9 = vector.broadcast %8 : vector<8x1xf32> to vector<8x64xf32>
    %10 = arith.addf %4, %9 : vector<8x64xf32>
    %11 = arith.addf %10, %7 : vector<8x64xf32>
    %12 = arith.truncf %11 : vector<8x64xf32> to vector<8x64xbf16>
    %c0_11 = arith.constant 0 : index
    %c0_12 = arith.constant 0 : index
    %c0_13 = arith.constant 0 : index
    %13 = vector.load %arg5[%c0_11, %c0_12, %c0_13] : memref<1x8x64xbf16, #tpu.memory_space<vmem>>, vector<1x8x64xbf16>
    %14 = vector.shape_cast %13 : vector<1x8x64xbf16> to vector<8x64xbf16>
    %15 = vector.shape_cast %12 : vector<8x64xbf16> to vector<1x8x64xbf16>
    tpu.vector_store %arg5[%c0_11, %c0_12, %c0_13], %15 {strides = array<i32>} : memref<1x8x64xbf16, #tpu.memory_space<vmem>>, vector<1x8x64xbf16>,
    return
  }
  func.func @transform_0(%arg0: i32) -> (i32, i32, i32) {
    %c0_i32 = arith.constant 0 : i32
    %c0_i32_0 = arith.constant 0 : i32
    %c0_i32_1 = arith.constant 0 : i32
    %c0_i32_2 = arith.constant 0 : i32
    return %c0_i32, %c0_i32_0, %c0_i32_1 : i32, i32, i32
  }
  func.func @transform_1(%arg0: i32) -> (i32, i32) {
    %c0_i32 = arith.constant 0 : i32
    %c0_i32_0 = arith.constant 0 : i32
    %c0_i32_1 = arith.constant 0 : i32
    return %c0_i32, %c0_i32_0 : i32, i32
  }
  func.func @transform_2(%arg0: i32) -> (i32, i32, i32, i32) {
    %c0_i32 = arith.constant 0 : i32
    %c0_i32_0 = arith.constant 0 : i32
    %c0_i32_1 = arith.constant 0 : i32
    %c0_i32_2 = arith.constant 0 : i32
    return %arg0, %c0_i32, %c0_i32_0, %c0_i32_1 : i32, i32, i32, i32
  }
  func.func @transform_3(%arg0: i32) -> (i32, i32, i32) {
    %c0_i32 = arith.constant 0 : i32
    %c0_i32_0 = arith.constant 0 : i32
    %c0_i32_1 = arith.constant 0 : i32
    return %arg0, %c0_i32, %c0_i32_0 : i32, i32, i32
  }
  func.func @transform_4(%arg0: i32) -> (i32, i32, i32) {
    %c0_i32 = arith.constant 0 : i32
    %c0_i32_0 = arith.constant 0 : i32
    %c0_i32_1 = arith.constant 0 : i32
    return %arg0, %c0_i32, %c0_i32_0 : i32, i32, i32
  }
}

module attributes {stable_mosaic.version = 11 : i64} {
  func.func @kernel(%arg0: i32, %arg1: memref<9x8x8xbf16, #tpu.memory_space<vmem>>, %arg2: memref<8x1xf32, #tpu.memory_space<vmem>>, %arg3: memref<1x1x8x110xbf16, #tpu.memory_space<vmem>>, %arg4: memref<1x8x80xf32, #tpu.memory_space<vmem>>) attributes {dimension_semantics = [#tpu.dimension_semantics<parallel>], iteration_bounds = array<i64: 2>, scalar_prefetch = 0 : i64, scratch_operands = 0 : i64, tpu.core_type = #tpu.core_type<tc>, window_params = [{pipeline_mode = #tpu.pipeline_mode<synchronous>, transform_indices = @transform_0, window_bounds = array<i64: 9, 8, 8>}, {pipeline_mode = #tpu.pipeline_mode<synchronous>, transform_indices = @transform_1, window_bounds = array<i64: 8, 1>}, {transform_indices = @transform_2, window_bounds = array<i64: 1, 1, 8, 110>}, {transform_indices = @transform_3, window_bounds = array<i64: 1, 8, 80>}]} {
    %c0 = arith.constant 0 : index
    %c0_0 = arith.constant 0 : index
    %c0_1 = arith.constant 0 : index
    %c0_2 = arith.constant 0 : index
    %0 = vector.load %arg3[%c0, %c0_0, %c0_1, %c0_2] : memref<1x1x8x110xbf16, #tpu.memory_space<vmem>>, vector<1x1x8x80xbf16>
    %1 = vector.shape_cast %0 : vector<1x1x8x80xbf16> to vector<8x80xbf16>
    %c0_3 = arith.constant 0 : index
    %c0_4 = arith.constant 0 : index
    %c0_5 = arith.constant 0 : index
    %2 = vector.load %arg1[%c0_3, %c0_4, %c0_5] : memref<9x8x8xbf16, #tpu.memory_space<vmem>>, vector<1x8x8xbf16>
    %3 = vector.shape_cast %2 : vector<1x8x8xbf16> to vector<8x8xbf16>
    %cst = arith.constant dense<0.000000e+00> : vector<8x80xf32>
    %4 = tpu.matmul %3, %1, %cst {dimension_numbers = #tpu.dot_dimension_numbers<[1], [0], [0], [1], [0, 0, 1, 1], [], []>} : vector<8x8xbf16>, vector<8x80xbf16>, vector<8x80xf32> -> vector<8x80xf32>
    %c0_6 = arith.constant 0 : index
    %c0_7 = arith.constant 0 : index
    %c0_8 = arith.constant 0 : index
    %c1 = arith.constant 1 : index
    %5 = vector.load %arg3[%c0_6, %c0_7, %c0_8, %c1] : memref<1x1x8x110xbf16, #tpu.memory_space<vmem>>, vector<1x1x8x80xbf16>
    %6 = vector.shape_cast %5 : vector<1x1x8x80xbf16> to vector<8x80xbf16>
    %c1_9 = arith.constant 1 : index
    %c0_10 = arith.constant 0 : index
    %c0_11 = arith.constant 0 : index
    %7 = vector.load %arg1[%c1_9, %c0_10, %c0_11] : memref<9x8x8xbf16, #tpu.memory_space<vmem>>, vector<1x8x8xbf16>
    %8 = vector.shape_cast %7 : vector<1x8x8xbf16> to vector<8x8xbf16>
    %cst_12 = arith.constant dense<0.000000e+00> : vector<8x80xf32>
    %9 = tpu.matmul %8, %6, %cst_12 {dimension_numbers = #tpu.dot_dimension_numbers<[1], [0], [0], [1], [0, 0, 1, 1], [], []>} : vector<8x8xbf16>, vector<8x80xbf16>, vector<8x80xf32> -> vector<8x80xf32>
    %10 = arith.addf %4, %9 : vector<8x80xf32>
    %c0_13 = arith.constant 0 : index
    %c0_14 = arith.constant 0 : index
    %c0_15 = arith.constant 0 : index
    %c2 = arith.constant 2 : index
    %11 = vector.load %arg3[%c0_13, %c0_14, %c0_15, %c2] : memref<1x1x8x110xbf16, #tpu.memory_space<vmem>>, vector<1x1x8x80xbf16>
    %12 = vector.shape_cast %11 : vector<1x1x8x80xbf16> to vector<8x80xbf16>
    %c2_16 = arith.constant 2 : index
    %c0_17 = arith.constant 0 : index
    %c0_18 = arith.constant 0 : index
    %13 = vector.load %arg1[%c2_16, %c0_17, %c0_18] : memref<9x8x8xbf16, #tpu.memory_space<vmem>>, vector<1x8x8xbf16>
    %14 = vector.shape_cast %13 : vector<1x8x8xbf16> to vector<8x8xbf16>
    %cst_19 = arith.constant dense<0.000000e+00> : vector<8x80xf32>
    %15 = tpu.matmul %14, %12, %cst_19 {dimension_numbers = #tpu.dot_dimension_numbers<[1], [0], [0], [1], [0, 0, 1, 1], [], []>} : vector<8x8xbf16>, vector<8x80xbf16>, vector<8x80xf32> -> vector<8x80xf32>
    %16 = arith.addf %10, %15 : vector<8x80xf32>
    %c0_20 = arith.constant 0 : index
    %c0_21 = arith.constant 0 : index
    %c0_22 = arith.constant 0 : index
    %c10 = arith.constant 10 : index
    %17 = vector.load %arg3[%c0_20, %c0_21, %c0_22, %c10] : memref<1x1x8x110xbf16, #tpu.memory_space<vmem>>, vector<1x1x8x80xbf16>
    %18 = vector.shape_cast %17 : vector<1x1x8x80xbf16> to vector<8x80xbf16>
    %c3 = arith.constant 3 : index
    %c0_23 = arith.constant 0 : index
    %c0_24 = arith.constant 0 : index
    %19 = vector.load %arg1[%c3, %c0_23, %c0_24] : memref<9x8x8xbf16, #tpu.memory_space<vmem>>, vector<1x8x8xbf16>
    %20 = vector.shape_cast %19 : vector<1x8x8xbf16> to vector<8x8xbf16>
    %cst_25 = arith.constant dense<0.000000e+00> : vector<8x80xf32>
    %21 = tpu.matmul %20, %18, %cst_25 {dimension_numbers = #tpu.dot_dimension_numbers<[1], [0], [0], [1], [0, 0, 1, 1], [], []>} : vector<8x8xbf16>, vector<8x80xbf16>, vector<8x80xf32> -> vector<8x80xf32>
    %22 = arith.addf %16, %21 : vector<8x80xf32>
    %c0_26 = arith.constant 0 : index
    %c0_27 = arith.constant 0 : index
    %c0_28 = arith.constant 0 : index
    %c11 = arith.constant 11 : index
    %23 = vector.load %arg3[%c0_26, %c0_27, %c0_28, %c11] : memref<1x1x8x110xbf16, #tpu.memory_space<vmem>>, vector<1x1x8x80xbf16>
    %24 = vector.shape_cast %23 : vector<1x1x8x80xbf16> to vector<8x80xbf16>
    %c4 = arith.constant 4 : index
    %c0_29 = arith.constant 0 : index
    %c0_30 = arith.constant 0 : index
    %25 = vector.load %arg1[%c4, %c0_29, %c0_30] : memref<9x8x8xbf16, #tpu.memory_space<vmem>>, vector<1x8x8xbf16>
    %26 = vector.shape_cast %25 : vector<1x8x8xbf16> to vector<8x8xbf16>
    %cst_31 = arith.constant dense<0.000000e+00> : vector<8x80xf32>
    %27 = tpu.matmul %26, %24, %cst_31 {dimension_numbers = #tpu.dot_dimension_numbers<[1], [0], [0], [1], [0, 0, 1, 1], [], []>} : vector<8x8xbf16>, vector<8x80xbf16>, vector<8x80xf32> -> vector<8x80xf32>
    %28 = arith.addf %22, %27 : vector<8x80xf32>
    %c0_32 = arith.constant 0 : index
    %c0_33 = arith.constant 0 : index
    %c0_34 = arith.constant 0 : index
    %c12 = arith.constant 12 : index
    %29 = vector.load %arg3[%c0_32, %c0_33, %c0_34, %c12] : memref<1x1x8x110xbf16, #tpu.memory_space<vmem>>, vector<1x1x8x80xbf16>
    %30 = vector.shape_cast %29 : vector<1x1x8x80xbf16> to vector<8x80xbf16>
    %c5 = arith.constant 5 : index
    %c0_35 = arith.constant 0 : index
    %c0_36 = arith.constant 0 : index
    %31 = vector.load %arg1[%c5, %c0_35, %c0_36] : memref<9x8x8xbf16, #tpu.memory_space<vmem>>, vector<1x8x8xbf16>
    %32 = vector.shape_cast %31 : vector<1x8x8xbf16> to vector<8x8xbf16>
    %cst_37 = arith.constant dense<0.000000e+00> : vector<8x80xf32>
    %33 = tpu.matmul %32, %30, %cst_37 {dimension_numbers = #tpu.dot_dimension_numbers<[1], [0], [0], [1], [0, 0, 1, 1], [], []>} : vector<8x8xbf16>, vector<8x80xbf16>, vector<8x80xf32> -> vector<8x80xf32>
    %34 = arith.addf %28, %33 : vector<8x80xf32>
    %c0_38 = arith.constant 0 : index
    %c0_39 = arith.constant 0 : index
    %c0_40 = arith.constant 0 : index
    %c20 = arith.constant 20 : index
    %35 = vector.load %arg3[%c0_38, %c0_39, %c0_40, %c20] : memref<1x1x8x110xbf16, #tpu.memory_space<vmem>>, vector<1x1x8x80xbf16>
    %36 = vector.shape_cast %35 : vector<1x1x8x80xbf16> to vector<8x80xbf16>
    %c6 = arith.constant 6 : index
    %c0_41 = arith.constant 0 : index
    %c0_42 = arith.constant 0 : index
    %37 = vector.load %arg1[%c6, %c0_41, %c0_42] : memref<9x8x8xbf16, #tpu.memory_space<vmem>>, vector<1x8x8xbf16>
    %38 = vector.shape_cast %37 : vector<1x8x8xbf16> to vector<8x8xbf16>
    %cst_43 = arith.constant dense<0.000000e+00> : vector<8x80xf32>
    %39 = tpu.matmul %38, %36, %cst_43 {dimension_numbers = #tpu.dot_dimension_numbers<[1], [0], [0], [1], [0, 0, 1, 1], [], []>} : vector<8x8xbf16>, vector<8x80xbf16>, vector<8x80xf32> -> vector<8x80xf32>
    %40 = arith.addf %34, %39 : vector<8x80xf32>
    %c0_44 = arith.constant 0 : index
    %c0_45 = arith.constant 0 : index
    %c0_46 = arith.constant 0 : index
    %c21 = arith.constant 21 : index
    %41 = vector.load %arg3[%c0_44, %c0_45, %c0_46, %c21] : memref<1x1x8x110xbf16, #tpu.memory_space<vmem>>, vector<1x1x8x80xbf16>
    %42 = vector.shape_cast %41 : vector<1x1x8x80xbf16> to vector<8x80xbf16>
    %c7 = arith.constant 7 : index
    %c0_47 = arith.constant 0 : index
    %c0_48 = arith.constant 0 : index
    %43 = vector.load %arg1[%c7, %c0_47, %c0_48] : memref<9x8x8xbf16, #tpu.memory_space<vmem>>, vector<1x8x8xbf16>
    %44 = vector.shape_cast %43 : vector<1x8x8xbf16> to vector<8x8xbf16>
    %cst_49 = arith.constant dense<0.000000e+00> : vector<8x80xf32>
    %45 = tpu.matmul %44, %42, %cst_49 {dimension_numbers = #tpu.dot_dimension_numbers<[1], [0], [0], [1], [0, 0, 1, 1], [], []>} : vector<8x8xbf16>, vector<8x80xbf16>, vector<8x80xf32> -> vector<8x80xf32>
    %46 = arith.addf %40, %45 : vector<8x80xf32>
    %c0_50 = arith.constant 0 : index
    %c0_51 = arith.constant 0 : index
    %c0_52 = arith.constant 0 : index
    %c22 = arith.constant 22 : index
    %47 = vector.load %arg3[%c0_50, %c0_51, %c0_52, %c22] : memref<1x1x8x110xbf16, #tpu.memory_space<vmem>>, vector<1x1x8x80xbf16>
    %48 = vector.shape_cast %47 : vector<1x1x8x80xbf16> to vector<8x80xbf16>
    %c8 = arith.constant 8 : index
    %c0_53 = arith.constant 0 : index
    %c0_54 = arith.constant 0 : index
    %49 = vector.load %arg1[%c8, %c0_53, %c0_54] : memref<9x8x8xbf16, #tpu.memory_space<vmem>>, vector<1x8x8xbf16>
    %50 = vector.shape_cast %49 : vector<1x8x8xbf16> to vector<8x8xbf16>
    %cst_55 = arith.constant dense<0.000000e+00> : vector<8x80xf32>
    %51 = tpu.matmul %50, %48, %cst_55 {dimension_numbers = #tpu.dot_dimension_numbers<[1], [0], [0], [1], [0, 0, 1, 1], [], []>} : vector<8x8xbf16>, vector<8x80xbf16>, vector<8x80xf32> -> vector<8x80xf32>
    %52 = arith.addf %46, %51 : vector<8x80xf32>
    %c0_56 = arith.constant 0 : index
    %c0_57 = arith.constant 0 : index
    %53 = vector.load %arg2[%c0_56, %c0_57] : memref<8x1xf32, #tpu.memory_space<vmem>>, vector<8x1xf32>
    %54 = vector.broadcast %53 : vector<8x1xf32> to vector<8x80xf32>
    %55 = arith.addf %52, %54 : vector<8x80xf32>
    %c0_58 = arith.constant 0 : index
    %c0_59 = arith.constant 0 : index
    %c0_60 = arith.constant 0 : index
    %56 = vector.load %arg4[%c0_58, %c0_59, %c0_60] : memref<1x8x80xf32, #tpu.memory_space<vmem>>, vector<1x8x80xf32>
    %57 = vector.shape_cast %56 : vector<1x8x80xf32> to vector<8x80xf32>
    %58 = vector.shape_cast %55 : vector<8x80xf32> to vector<1x8x80xf32>
    tpu.vector_store %arg4[%c0_58, %c0_59, %c0_60], %58 {strides = array<i32>} : memref<1x8x80xf32, #tpu.memory_space<vmem>>, vector<1x8x80xf32>,
    return
  }
  func.func @transform_0(%arg0: i32) -> (i32, i32, i32) {
    %c0_i32 = arith.constant 0 : i32
    %c0_i32_0 = arith.constant 0 : i32
    %c0_i32_1 = arith.constant 0 : i32
    %c0_i32_2 = arith.constant 0 : i32
    return %c0_i32, %c0_i32_0, %c0_i32_1 : i32, i32, i32
  }
  func.func @transform_1(%arg0: i32) -> (i32, i32) {
    %c0_i32 = arith.constant 0 : i32
    %c0_i32_0 = arith.constant 0 : i32
    %c0_i32_1 = arith.constant 0 : i32
    return %c0_i32, %c0_i32_0 : i32, i32
  }
  func.func @transform_2(%arg0: i32) -> (i32, i32, i32, i32) {
    %c0_i32 = arith.constant 0 : i32
    %c0_i32_0 = arith.constant 0 : i32
    %c0_i32_1 = arith.constant 0 : i32
    %c0_i32_2 = arith.constant 0 : i32
    return %arg0, %c0_i32, %c0_i32_0, %c0_i32_1 : i32, i32, i32, i32
  }
  func.func @transform_3(%arg0: i32) -> (i32, i32, i32) {
    %c0_i32 = arith.constant 0 : i32
    %c0_i32_0 = arith.constant 0 : i32
    %c0_i32_1 = arith.constant 0 : i32
    return %arg0, %c0_i32, %c0_i32_0 : i32, i32, i32
  }
}

module attributes {stable_mosaic.version = 11 : i64} {
  func.func @kernel(%arg0: i32, %arg1: memref<9x8x8xbf16, #tpu.memory_space<vmem>>, %arg2: memref<8x1xf32, #tpu.memory_space<vmem>>, %arg3: memref<1x1x8x42xbf16, #tpu.memory_space<vmem>>, %arg4: memref<1x8x24xf32, #tpu.memory_space<vmem>>) attributes {dimension_semantics = [#tpu.dimension_semantics<parallel>], iteration_bounds = array<i64: 2>, scalar_prefetch = 0 : i64, scratch_operands = 0 : i64, tpu.core_type = #tpu.core_type<tc>, window_params = [{pipeline_mode = #tpu.pipeline_mode<synchronous>, transform_indices = @transform_0, window_bounds = array<i64: 9, 8, 8>}, {pipeline_mode = #tpu.pipeline_mode<synchronous>, transform_indices = @transform_1, window_bounds = array<i64: 8, 1>}, {transform_indices = @transform_2, window_bounds = array<i64: 1, 1, 8, 42>}, {transform_indices = @transform_3, window_bounds = array<i64: 1, 8, 24>}]} {
    %c0 = arith.constant 0 : index
    %c0_0 = arith.constant 0 : index
    %c0_1 = arith.constant 0 : index
    %c0_2 = arith.constant 0 : index
    %0 = vector.load %arg3[%c0, %c0_0, %c0_1, %c0_2] : memref<1x1x8x42xbf16, #tpu.memory_space<vmem>>, vector<1x1x8x24xbf16>
    %1 = vector.shape_cast %0 : vector<1x1x8x24xbf16> to vector<8x24xbf16>
    %c0_3 = arith.constant 0 : index
    %c0_4 = arith.constant 0 : index
    %c0_5 = arith.constant 0 : index
    %2 = vector.load %arg1[%c0_3, %c0_4, %c0_5] : memref<9x8x8xbf16, #tpu.memory_space<vmem>>, vector<1x8x8xbf16>
    %3 = vector.shape_cast %2 : vector<1x8x8xbf16> to vector<8x8xbf16>
    %cst = arith.constant dense<0.000000e+00> : vector<8x24xf32>
    %4 = tpu.matmul %3, %1, %cst {dimension_numbers = #tpu.dot_dimension_numbers<[1], [0], [0], [1], [0, 0, 1, 1], [], []>} : vector<8x8xbf16>, vector<8x24xbf16>, vector<8x24xf32> -> vector<8x24xf32>
    %c0_6 = arith.constant 0 : index
    %c0_7 = arith.constant 0 : index
    %c0_8 = arith.constant 0 : index
    %c1 = arith.constant 1 : index
    %5 = vector.load %arg3[%c0_6, %c0_7, %c0_8, %c1] : memref<1x1x8x42xbf16, #tpu.memory_space<vmem>>, vector<1x1x8x24xbf16>
    %6 = vector.shape_cast %5 : vector<1x1x8x24xbf16> to vector<8x24xbf16>
    %c1_9 = arith.constant 1 : index
    %c0_10 = arith.constant 0 : index
    %c0_11 = arith.constant 0 : index
    %7 = vector.load %arg1[%c1_9, %c0_10, %c0_11] : memref<9x8x8xbf16, #tpu.memory_space<vmem>>, vector<1x8x8xbf16>
    %8 = vector.shape_cast %7 : vector<1x8x8xbf16> to vector<8x8xbf16>
    %cst_12 = arith.constant dense<0.000000e+00> : vector<8x24xf32>
    %9 = tpu.matmul %8, %6, %cst_12 {dimension_numbers = #tpu.dot_dimension_numbers<[1], [0], [0], [1], [0, 0, 1, 1], [], []>} : vector<8x8xbf16>, vector<8x24xbf16>, vector<8x24xf32> -> vector<8x24xf32>
    %10 = arith.addf %4, %9 : vector<8x24xf32>
    %c0_13 = arith.constant 0 : index
    %c0_14 = arith.constant 0 : index
    %c0_15 = arith.constant 0 : index
    %c2 = arith.constant 2 : index
    %11 = vector.load %arg3[%c0_13, %c0_14, %c0_15, %c2] : memref<1x1x8x42xbf16, #tpu.memory_space<vmem>>, vector<1x1x8x24xbf16>
    %12 = vector.shape_cast %11 : vector<1x1x8x24xbf16> to vector<8x24xbf16>
    %c2_16 = arith.constant 2 : index
    %c0_17 = arith.constant 0 : index
    %c0_18 = arith.constant 0 : index
    %13 = vector.load %arg1[%c2_16, %c0_17, %c0_18] : memref<9x8x8xbf16, #tpu.memory_space<vmem>>, vector<1x8x8xbf16>
    %14 = vector.shape_cast %13 : vector<1x8x8xbf16> to vector<8x8xbf16>
    %cst_19 = arith.constant dense<0.000000e+00> : vector<8x24xf32>
    %15 = tpu.matmul %14, %12, %cst_19 {dimension_numbers = #tpu.dot_dimension_numbers<[1], [0], [0], [1], [0, 0, 1, 1], [], []>} : vector<8x8xbf16>, vector<8x24xbf16>, vector<8x24xf32> -> vector<8x24xf32>
    %16 = arith.addf %10, %15 : vector<8x24xf32>
    %c0_20 = arith.constant 0 : index
    %c0_21 = arith.constant 0 : index
    %c0_22 = arith.constant 0 : index
    %c6 = arith.constant 6 : index
    %17 = vector.load %arg3[%c0_20, %c0_21, %c0_22, %c6] : memref<1x1x8x42xbf16, #tpu.memory_space<vmem>>, vector<1x1x8x24xbf16>
    %18 = vector.shape_cast %17 : vector<1x1x8x24xbf16> to vector<8x24xbf16>
    %c3 = arith.constant 3 : index
    %c0_23 = arith.constant 0 : index
    %c0_24 = arith.constant 0 : index
    %19 = vector.load %arg1[%c3, %c0_23, %c0_24] : memref<9x8x8xbf16, #tpu.memory_space<vmem>>, vector<1x8x8xbf16>
    %20 = vector.shape_cast %19 : vector<1x8x8xbf16> to vector<8x8xbf16>
    %cst_25 = arith.constant dense<0.000000e+00> : vector<8x24xf32>
    %21 = tpu.matmul %20, %18, %cst_25 {dimension_numbers = #tpu.dot_dimension_numbers<[1], [0], [0], [1], [0, 0, 1, 1], [], []>} : vector<8x8xbf16>, vector<8x24xbf16>, vector<8x24xf32> -> vector<8x24xf32>
    %22 = arith.addf %16, %21 : vector<8x24xf32>
    %c0_26 = arith.constant 0 : index
    %c0_27 = arith.constant 0 : index
    %c0_28 = arith.constant 0 : index
    %c7 = arith.constant 7 : index
    %23 = vector.load %arg3[%c0_26, %c0_27, %c0_28, %c7] : memref<1x1x8x42xbf16, #tpu.memory_space<vmem>>, vector<1x1x8x24xbf16>
    %24 = vector.shape_cast %23 : vector<1x1x8x24xbf16> to vector<8x24xbf16>
    %c4 = arith.constant 4 : index
    %c0_29 = arith.constant 0 : index
    %c0_30 = arith.constant 0 : index
    %25 = vector.load %arg1[%c4, %c0_29, %c0_30] : memref<9x8x8xbf16, #tpu.memory_space<vmem>>, vector<1x8x8xbf16>
    %26 = vector.shape_cast %25 : vector<1x8x8xbf16> to vector<8x8xbf16>
    %cst_31 = arith.constant dense<0.000000e+00> : vector<8x24xf32>
    %27 = tpu.matmul %26, %24, %cst_31 {dimension_numbers = #tpu.dot_dimension_numbers<[1], [0], [0], [1], [0, 0, 1, 1], [], []>} : vector<8x8xbf16>, vector<8x24xbf16>, vector<8x24xf32> -> vector<8x24xf32>
    %28 = arith.addf %22, %27 : vector<8x24xf32>
    %c0_32 = arith.constant 0 : index
    %c0_33 = arith.constant 0 : index
    %c0_34 = arith.constant 0 : index
    %c8 = arith.constant 8 : index
    %29 = vector.load %arg3[%c0_32, %c0_33, %c0_34, %c8] : memref<1x1x8x42xbf16, #tpu.memory_space<vmem>>, vector<1x1x8x24xbf16>
    %30 = vector.shape_cast %29 : vector<1x1x8x24xbf16> to vector<8x24xbf16>
    %c5 = arith.constant 5 : index
    %c0_35 = arith.constant 0 : index
    %c0_36 = arith.constant 0 : index
    %31 = vector.load %arg1[%c5, %c0_35, %c0_36] : memref<9x8x8xbf16, #tpu.memory_space<vmem>>, vector<1x8x8xbf16>
    %32 = vector.shape_cast %31 : vector<1x8x8xbf16> to vector<8x8xbf16>
    %cst_37 = arith.constant dense<0.000000e+00> : vector<8x24xf32>
    %33 = tpu.matmul %32, %30, %cst_37 {dimension_numbers = #tpu.dot_dimension_numbers<[1], [0], [0], [1], [0, 0, 1, 1], [], []>} : vector<8x8xbf16>, vector<8x24xbf16>, vector<8x24xf32> -> vector<8x24xf32>
    %34 = arith.addf %28, %33 : vector<8x24xf32>
    %c0_38 = arith.constant 0 : index
    %c0_39 = arith.constant 0 : index
    %c0_40 = arith.constant 0 : index
    %c12 = arith.constant 12 : index
    %35 = vector.load %arg3[%c0_38, %c0_39, %c0_40, %c12] : memref<1x1x8x42xbf16, #tpu.memory_space<vmem>>, vector<1x1x8x24xbf16>
    %36 = vector.shape_cast %35 : vector<1x1x8x24xbf16> to vector<8x24xbf16>
    %c6_41 = arith.constant 6 : index
    %c0_42 = arith.constant 0 : index
    %c0_43 = arith.constant 0 : index
    %37 = vector.load %arg1[%c6_41, %c0_42, %c0_43] : memref<9x8x8xbf16, #tpu.memory_space<vmem>>, vector<1x8x8xbf16>
    %38 = vector.shape_cast %37 : vector<1x8x8xbf16> to vector<8x8xbf16>
    %cst_44 = arith.constant dense<0.000000e+00> : vector<8x24xf32>
    %39 = tpu.matmul %38, %36, %cst_44 {dimension_numbers = #tpu.dot_dimension_numbers<[1], [0], [0], [1], [0, 0, 1, 1], [], []>} : vector<8x8xbf16>, vector<8x24xbf16>, vector<8x24xf32> -> vector<8x24xf32>
    %40 = arith.addf %34, %39 : vector<8x24xf32>
    %c0_45 = arith.constant 0 : index
    %c0_46 = arith.constant 0 : index
    %c0_47 = arith.constant 0 : index
    %c13 = arith.constant 13 : index
    %41 = vector.load %arg3[%c0_45, %c0_46, %c0_47, %c13] : memref<1x1x8x42xbf16, #tpu.memory_space<vmem>>, vector<1x1x8x24xbf16>
    %42 = vector.shape_cast %41 : vector<1x1x8x24xbf16> to vector<8x24xbf16>
    %c7_48 = arith.constant 7 : index
    %c0_49 = arith.constant 0 : index
    %c0_50 = arith.constant 0 : index
    %43 = vector.load %arg1[%c7_48, %c0_49, %c0_50] : memref<9x8x8xbf16, #tpu.memory_space<vmem>>, vector<1x8x8xbf16>
    %44 = vector.shape_cast %43 : vector<1x8x8xbf16> to vector<8x8xbf16>
    %cst_51 = arith.constant dense<0.000000e+00> : vector<8x24xf32>
    %45 = tpu.matmul %44, %42, %cst_51 {dimension_numbers = #tpu.dot_dimension_numbers<[1], [0], [0], [1], [0, 0, 1, 1], [], []>} : vector<8x8xbf16>, vector<8x24xbf16>, vector<8x24xf32> -> vector<8x24xf32>
    %46 = arith.addf %40, %45 : vector<8x24xf32>
    %c0_52 = arith.constant 0 : index
    %c0_53 = arith.constant 0 : index
    %c0_54 = arith.constant 0 : index
    %c14 = arith.constant 14 : index
    %47 = vector.load %arg3[%c0_52, %c0_53, %c0_54, %c14] : memref<1x1x8x42xbf16, #tpu.memory_space<vmem>>, vector<1x1x8x24xbf16>
    %48 = vector.shape_cast %47 : vector<1x1x8x24xbf16> to vector<8x24xbf16>
    %c8_55 = arith.constant 8 : index
    %c0_56 = arith.constant 0 : index
    %c0_57 = arith.constant 0 : index
    %49 = vector.load %arg1[%c8_55, %c0_56, %c0_57] : memref<9x8x8xbf16, #tpu.memory_space<vmem>>, vector<1x8x8xbf16>
    %50 = vector.shape_cast %49 : vector<1x8x8xbf16> to vector<8x8xbf16>
    %cst_58 = arith.constant dense<0.000000e+00> : vector<8x24xf32>
    %51 = tpu.matmul %50, %48, %cst_58 {dimension_numbers = #tpu.dot_dimension_numbers<[1], [0], [0], [1], [0, 0, 1, 1], [], []>} : vector<8x8xbf16>, vector<8x24xbf16>, vector<8x24xf32> -> vector<8x24xf32>
    %52 = arith.addf %46, %51 : vector<8x24xf32>
    %c0_59 = arith.constant 0 : index
    %c0_60 = arith.constant 0 : index
    %53 = vector.load %arg2[%c0_59, %c0_60] : memref<8x1xf32, #tpu.memory_space<vmem>>, vector<8x1xf32>
    %54 = vector.broadcast %53 : vector<8x1xf32> to vector<8x24xf32>
    %55 = arith.addf %52, %54 : vector<8x24xf32>
    %c0_61 = arith.constant 0 : index
    %c0_62 = arith.constant 0 : index
    %c0_63 = arith.constant 0 : index
    %56 = vector.load %arg4[%c0_61, %c0_62, %c0_63] : memref<1x8x24xf32, #tpu.memory_space<vmem>>, vector<1x8x24xf32>
    %57 = vector.shape_cast %56 : vector<1x8x24xf32> to vector<8x24xf32>
    %58 = vector.shape_cast %55 : vector<8x24xf32> to vector<1x8x24xf32>
    tpu.vector_store %arg4[%c0_61, %c0_62, %c0_63], %58 {strides = array<i32>} : memref<1x8x24xf32, #tpu.memory_space<vmem>>, vector<1x8x24xf32>,
    return
  }
  func.func @transform_0(%arg0: i32) -> (i32, i32, i32) {
    %c0_i32 = arith.constant 0 : i32
    %c0_i32_0 = arith.constant 0 : i32
    %c0_i32_1 = arith.constant 0 : i32
    %c0_i32_2 = arith.constant 0 : i32
    return %c0_i32, %c0_i32_0, %c0_i32_1 : i32, i32, i32
  }
  func.func @transform_1(%arg0: i32) -> (i32, i32) {
    %c0_i32 = arith.constant 0 : i32
    %c0_i32_0 = arith.constant 0 : i32
    %c0_i32_1 = arith.constant 0 : i32
    return %c0_i32, %c0_i32_0 : i32, i32
  }
  func.func @transform_2(%arg0: i32) -> (i32, i32, i32, i32) {
    %c0_i32 = arith.constant 0 : i32
    %c0_i32_0 = arith.constant 0 : i32
    %c0_i32_1 = arith.constant 0 : i32
    %c0_i32_2 = arith.constant 0 : i32
    return %arg0, %c0_i32, %c0_i32_0, %c0_i32_1 : i32, i32, i32, i32
  }
  func.func @transform_3(%arg0: i32) -> (i32, i32, i32) {
    %c0_i32 = arith.constant 0 : i32
    %c0_i32_0 = arith.constant 0 : i32
    %c0_i32_1 = arith.constant 0 : i32
    return %arg0, %c0_i32, %c0_i32_0 : i32, i32, i32
  }
}

</mosaic_0001>

<bundles_post_ra>
// kernel: backbone_with_fpn_forward.6
= control target key start
LH: loop header
LB: loop body
LE: loop exit
PB: predicated region body
PF: predicated region fallthrough
CT: control target
= control target key end

     0   :  { %s1015_s12 = smov 0   ;;  %s1125_s0 = inlined_call_operand.vmem [shape: bf16[9,16,4], index: 0, kind: input, shape index: {}]   ;;  %s1126_s1 = inlined_call_operand.vmem [shape: f32[16,1], index: 1, kind: input, shape index: {}]   ;;  %s1127_s2 = inlined_call_operand.vmem [shape: bf16[2,4,4,90], index: 2, kind: input, shape index: {}]   ;;  %s1128_s3 = inlined_call_operand.vmem [shape: bf16[2,16,72], index: 3, kind: output, shape index: {}]  }
   0x1 LB: > { %s824_s13 = sadd.s32 4294967295, %s986_s12   ;;  %p828_p0 = scmp.ge.s32.totalorder %s986_s12, 1  ;;  %s986_s12 = sphi %s1015_s12, %s13_s12  }
   0x2   : > { %p137_p1 = scmp.lt.s32.totalorder %s986_s12, 3 }
   0x4   : > { %p138_p2 = pnand %p828_p0, %p137_p1 }
   0x5   : > { %p161_p3 = scmp.lt.s32.totalorder (!%p138_p2), %s824_s13, 1  ;;  %v298_v0 = vlaneseq (!%p138_p2)  ;;  %v988_v1 = vmov (!%p138_p2), 1983009808   ;;  %v989_v3 = vmov (!%p138_p2), 0.0   ;;  %vm990_vm0 = vmmov (!%p138_p2), 0   ;;  %v971_v7 = vld [vmem:[%s1125_s0 + $0x8] sm:$0xff] (!%p138_p2)  }
   0x6   : > { %141 = sbr.rel (%p138_p2) target bundleno = 385 (0x181), region = 32  ;;  %v296_v2 = vunpack.c.l.s4 (!%p138_p2), %v988_v1  ;;  %900 = vmatprep.subr.bf16.mxu0 (!%p138_p2), %v989_v3  ;;  %906 = vmatprep.subr.bf16.mxu1 (!%p138_p2), %v989_v3  ;;  %vm189_vm1 = vcmask (!%p138_p2), 1041408   ;;  %s991_s20 = smov (!%p138_p2), 119   ;;  %vm185_vm2 = vcmask (!%p138_p2), 31744   ;;  %v972_v16 = vld [vmem:[%s1125_s0] sm:$0xff] (!%p138_p2)   ;;  %v974_v19 = vld [vmem:[%s1125_s0 + $0x18] sm:$0xff] (!%p138_p2)  }
   0x7   : > { %v299_v4 = vshrl.u32 (!%p138_p2), %v298_v0, 7  ;;  %902 = vmatprep.mubr.msk.bf16.mxu0 (!%p138_p2), %vm990_vm0, %v989_v3  ;;  %908 = vmatprep.mubr.msk.bf16.mxu1 (!%p138_p2), %vm990_vm0, %v989_v3  ;;  %s992_s23 = smov (!%p138_p2), 127   ;;  %s993_s26 = smov (!%p138_p2), 118   ;;  %v742_v20 = vld [vmem:[%s1126_s1] sm:$0xff] (!%p138_p2)  ;;  %v743_v21 = vld [vmem:[%s1126_s1 + $0x8] sm:$0xff] (!%p138_p2)  ;;  %v994_v22 = vmov (!%p138_p2), 0  }
   0x8   : > { %v297_v5 = vunpack.c.0.s8 (!%p138_p2), %v296_v2  ;;  %969 = vset.pattern.permute.xlu1 (!%p138_p2), %v994_v22  ;;  %970 = vset.pattern.permute.xlu0 (!%p138_p2), %v994_v22  ;;  %v973_v27 = vld [vmem:[%s1125_s0 + $0x10] sm:$0xff] (!%p138_p2)   ;;  %v976_v32 = vld [vmem:[%s1125_s0 + $0x28] sm:$0xff] (!%p138_p2)   ;;  %v975_v34 = vld [vmem:[%s1125_s0 + $0x20] sm:$0xff] (!%p138_p2)   ;;  %vm766_vm3 = vcmask (!%p138_p2), 584704  }
   0x9   : > { %v978_v36 = vld [vmem:[%s1125_s0 + $0x38] sm:$0xff] (!%p138_p2)   ;;  %v977_v38 = vld [vmem:[%s1125_s0 + $0x30] sm:$0xff] (!%p138_p2)   ;;  %v979_v40 = vld [vmem:[%s1125_s0 + $0x40] sm:$0xff] (!%p138_p2)  }
   0xa   : > { %v300_v6 = vsub.s32 (!%p138_p2), %v297_v5, %v299_v4 }
   0xd   : > { %s1130_s13 = smov (!%p161_p3, %s824_s13), 1 }
   0xe   : > { %s878_s14 = sshll.u32 %s1130_s13, 3 }
   0xf   : > { %s1037_s17 = scalar_lea.vmem %s1127_s2, %s878_s14  ;;  %s170_s21 = scalar_lea.vmem %s1128_s3, %s878_s14 }
  0x10   : > { %v172_v8 = vld [vmem:[%s1037_s17] sm:$0x3]  ;;  %v844_v9 = vld [vmem:[%s1037_s17 + $0x4] sm:$0x3]  ;;  %v833_v10 = vld [vmem:[%s1037_s17 + $0x2] sm:$0x3] }
  0x11   : > { %v301_v11 = vrot.slane %v172_v8, %v300_v6  ;;  %v861_v12 = vld.sshfl [vmem:[%s1037_s17] sm:$0x3 pattern:$0x76325410]  ;;  %v191_v13 = vsel %vm189_vm1, %v833_v10, 0  ;;  %v243_v14 = vsel %vm189_vm1, %v172_v8, 0  ;;  %v486_v17 = vrot.slane %v844_v9, %v300_v6 }
  0x12   : > { %555 = vrot.lane.b32.xlu1 %v861_v12, %s991_s20  ;;  %v867_v15 = vld.sshfl [vmem:[%s1037_s17 + $0x2] sm:$0x3 pattern:$0x76325410]  ;;  %901 = vmatpush3.bf16.msra.mxu0 %v191_v13  ;;  %v367_v18 = vsel %vm189_vm1, %v844_v9, 0 }
  0x13   : > { %302 = vrot.lane.b32.xlu0 %v301_v11, %s992_s23  ;;  %907 = vmatpush3.bf16.msra.mxu1 %v243_v14  ;;  %v849_v25 = vld [vmem:[%s1037_s17 + $0x6] sm:$0x3] }
  0x14   : > { %912 = vmatprep.subr.bf16.mxu0 %v989_v3  ;;  %918 = vmatprep.subr.bf16.mxu1 %v989_v3  ;;  %v426_v28 = vsel %vm189_vm1, %v849_v25, 0 }
  0x15   : > { %903 = vmatmul.mubr.msk.bf16.vlgmr.msra.gmra.mrb[0].mxu0 %vm185_vm2, %v971_v7 }
  0x16   : > { %623 = vrot.lane.b32.xlu1 %v867_v15, %s991_s20  ;;  %909 = vmatmul.mubr.msk.bf16.vlgmr.msra.gmra.mrb[0].mxu1 %vm185_vm2, %v972_v16 }
  0x17   : > { %487 = vrot.lane.b32.xlu0 %v486_v17, %s992_s23  ;;  %914 = vmatprep.mubr.msk.bf16.mxu0 %vm990_vm0, %v989_v3 }
  0x18   : > { %919 = vmatpush3.bf16.msra.mxu1 %v367_v18  ;;  %920 = vmatprep.mubr.msk.bf16.mxu1 %vm990_vm0, %v989_v3 }
  0x19   : > { %930 = vmatprep.subr.bf16.mxu1 %v989_v3 }
  0x1a   : > { %746 = vperm.xlu1 %969, %v742_v20  }
  0x1b   : > { %691 = vrot.lane.b32.xlu0 %v861_v12, %s993_s26 }
  0x1e   : > { %921 = vmatmul.mubr.msk.bf16.vlgmr.msra.gmra.mrb[4].mxu1 %vm185_vm2, %v974_v19 }
  0x1f   : > { %932 = vmatprep.mubr.msk.bf16.mxu1 %vm990_vm0, %v989_v3  ;;  %751 = vperm.xlu0 %970, %v743_v21  }
  0x84   : > { %v556_v23 = vpop.permute.xlu1 %555 }
  0x85   : > { %v303_v24 = vpop.permute.xlu0 %302  ;;  %v561_v35 = vsel %vm189_vm1, %v556_v23, 0 }
  0x86   : > { %v308_v26 = vsel %vm189_vm1, %v303_v24, 0 }
  0x87   : > { %913 = vmatpush3.bf16.msra.mxu0 %v308_v26 }
  0x88   : > { %924 = vmatprep.subr.bf16.mxu0 %v989_v3  ;;  %v624_v31 = vpop.permute.xlu1 %623 }
  0x89   : > { %v488_v29 = vpop.permute.xlu0 %487  ;;  %v629_v33 = vsel %vm189_vm1, %v624_v31, 0 }
  0x8a   : > { %915 = vmatmul.mubr.msk.bf16.vlgmr.msra.gmra.mrb[4].mxu0 %vm185_vm2, %v973_v27  ;;  %v493_v30 = vsel %vm189_vm1, %v488_v29, 0 }
  0x8b   : > { %925 = vmatpush3.bf16.msra.mxu0 %v426_v28  ;;  %926 = vmatprep.mubr.msk.bf16.mxu0 %vm990_vm0, %v989_v3 }
  0x8c   : > { %931 = vmatpush3.bf16.msra.mxu1 %v493_v30  ;;  %936 = vmatprep.subr.bf16.mxu0 %v989_v3 }
  0x8d   : > { %942 = vmatprep.subr.bf16.mxu1 %v989_v3  ;;  %v692_v37 = vpop.permute.xlu0 %691 }
  0x8e   : > { %v697_v39 = vsel %vm189_vm1, %v692_v37, 0 }
  0x8f   : > { %933 = vmatmul.mubr.msk.bf16.vlgmr.msra.gmra.mrb[8].mxu1 %vm185_vm2, %v976_v32 }
  0x90   : > { %943 = vmatpush3.bf16.msra.mxu1 %v629_v33  ;;  %944 = vmatprep.mubr.msk.bf16.mxu1 %vm990_vm0, %v989_v3 }
  0x92   : > { %927 = vmatmul.mubr.msk.bf16.vlgmr.msra.gmra.mrb[8].mxu0 %vm185_vm2, %v975_v34 }
  0x93   : > { %937 = vmatpush3.bf16.msra.mxu0 %v561_v35  ;;  %938 = vmatprep.mubr.msk.bf16.mxu0 %vm990_vm0, %v989_v3 }
  0x94   : > { %948 = vmatprep.subr.bf16.mxu0 %v989_v3 }
  0x97   : > { %945 = vmatmul.mubr.msk.bf16.vlgmr.msra.gmra.mrb[12].mxu1 %vm185_vm2, %v978_v36 }
  0x99   : > { %v747_v24 = vpop.permute.xlu1 %746 }
  0x9a   : > { %939 = vmatmul.mubr.msk.bf16.vlgmr.msra.gmra.mrb[12].mxu0 %vm185_vm2, %v977_v38 }
  0x9b   : > { %949 = vmatpush3.bf16.msra.mxu0 %v697_v39  ;;  %950 = vmatprep.mubr.msk.bf16.mxu0 %vm990_vm0, %v989_v3 }
  0x9e   : > { %v752_v28 = vpop.permute.xlu0 %751 }
  0xa2   : > { %951 = vmatmul.mubr.msk.bf16.vlgmr.msra.gmra.mrb[16].mxu0 %vm185_vm2, %v979_v40 }
  0xe8   : > { %v227_v41 = vpop.f32.mrb[0].mxu0 }
  0xe9   : > { %v904_v42 = vpop.f32.mrb[1].mxu0  ;;  %v279_v43 = vpop.f32.mrb[0].mxu1 }
  0xea   : > { %v280_v44 = vadd.f32 %v279_v43, %v227_v41  ;;  %v230_v45 = vpop.f32.mrb[2].mxu0  ;;  %v910_v46 = vpop.f32.mrb[1].mxu1 }
  0xeb   : > { %v905_v47 = vpop.f32.mrb[3].mxu0  ;;  %v282_v48 = vpop.f32.mrb[2].mxu1 }
  0xec   : > { %v283_v49 = vadd.f32 %v282_v48, %v230_v45  ;;  %v911_v50 = vpop.f32.mrb[3].mxu1 }
  0xf1   : > { %v403_v51 = vpop.f32.mrb[4].mxu1 }
  0xf2   : > { %v922_v52 = vpop.f32.mrb[5].mxu1 }
  0xf3   : > { %v406_v53 = vpop.f32.mrb[6].mxu1 }
  0xf4   : > { %v923_v54 = vpop.f32.mrb[7].mxu1 }
 0x15d   : > { %v344_v55 = vpop.f32.mrb[4].mxu0 }
 0x15e   : > { %v351_v56 = vadd.f32 %v344_v55, %v280_v44  ;;  %v916_v57 = vpop.f32.mrb[5].mxu0 }
 0x15f   : > { %v347_v58 = vpop.f32.mrb[6].mxu0 }
 0x160   : > { %v352_v59 = vadd.f32 %v347_v58, %v283_v49  ;;  %v410_v60 = vadd.f32 %v403_v51, %v351_v56  ;;  %v917_v61 = vpop.f32.mrb[7].mxu0 }
 0x162   : > { %v411_v62 = vadd.f32 %v406_v53, %v352_v59  ;;  %v529_v63 = vpop.f32.mrb[8].mxu1 }
 0x163   : > { %v934_v0 = vpop.f32.mrb[9].mxu1 }
 0x164   : > { %v532_v1 = vpop.f32.mrb[10].mxu1 }
 0x165   : > { %v462_v2 = vpop.f32.mrb[8].mxu0  ;;  %v935_v3 = vpop.f32.mrb[11].mxu1 }
 0x166   : > { %v469_v4 = vadd.f32 %v462_v2, %v410_v60  ;;  %v928_v5 = vpop.f32.mrb[9].mxu0 }
 0x167   : > { %v465_v6 = vpop.f32.mrb[10].mxu0 }
 0x168   : > { %v470_v7 = vadd.f32 %v465_v6, %v411_v62  ;;  %v536_v8 = vadd.f32 %v529_v63, %v469_v4  ;;  %v929_v9 = vpop.f32.mrb[11].mxu0 }
 0x16a   : > { %v537_v10 = vadd.f32 %v532_v1, %v470_v7  ;;  %v665_v11 = vpop.f32.mrb[12].mxu1 }
 0x16b   : > { %v946_v12 = vpop.f32.mrb[13].mxu1 }
 0x16c   : > { %v668_v13 = vpop.f32.mrb[14].mxu1 }
 0x16d   : > { %v597_v14 = vpop.f32.mrb[12].mxu0  ;;  %v947_v15 = vpop.f32.mrb[15].mxu1 }
 0x16e   : > { %v604_v16 = vadd.f32 %v597_v14, %v536_v8  ;;  %v940_v17 = vpop.f32.mrb[13].mxu0 }
 0x16f   : > { %v600_v18 = vpop.f32.mrb[14].mxu0 }
 0x170   : > { %v605_v19 = vadd.f32 %v600_v18, %v537_v10  ;;  %v672_v20 = vadd.f32 %v665_v11, %v604_v16  ;;  %v941_v21 = vpop.f32.mrb[15].mxu0 }
 0x172   : > { %v673_v22 = vadd.f32 %v668_v13, %v605_v19 }
 0x175   : > { %v733_v23 = vpop.f32.mrb[16].mxu0 }
 0x176   : > { %v740_v25 = vadd.f32 %v733_v23, %v672_v20  ;;  %v952_v26 = vpop.f32.mrb[17].mxu0 }
 0x177   : > { %v736_v27 = vpop.f32.mrb[18].mxu0 }
 0x178   : > { %v754_v29 = vadd.f32 %v747_v24, %v740_v25  ;;  %v741_v30 = vadd.f32 %v736_v27, %v673_v22  ;;  %v953_v31 = vpop.f32.mrb[19].mxu0 }
 0x17a   : > { %v756_v32 = vmax.f32 %v754_v29, 0.0  ;;  %v755_v33 = vadd.f32 %v752_v28, %v741_v30 }
 0x17c   : > { %v880_v34 = vpack.c.bf16 %v756_v32, %v756_v32  ;;  %v757_v35 = vmax.f32 %v755_v33, 0.0 }
 0x17e   : > { %767 = vst.msk [vmem:[%s170_s21] sm:$0xf] %vm766_vm3, %v880_v34  ;;  %v881_v36 = vpack.c.bf16 %v757_v35, %v757_v35 }
 0x180   : > { %768 = vst.msk [vmem:[%s170_s21 + $0x4] sm:$0xf] %vm766_vm3, %v881_v36 }
 0x181 PF: > { %s13_s12 = sadd.s32 1, %s986_s12  }
 0x182   : > { %p10_p4 = scmp.ge.s32.totalorder %s13_s12, 4  }
 0x184   :  { %12 = sbr.rel (!%p10_p4) target bundleno = 1 (0x1), region = 73 }

// kernel: backbone_with_fpn_forward.7
= control target key start
LH: loop header
LB: loop body
LE: loop exit
PB: predicated region body
PF: predicated region fallthrough
CT: control target
= control target key end

     0   :  { %s1268_s12 = smov 0   ;;  %s1373_s0 = inlined_call_operand.vmem [shape: bf16[9,32,16], index: 0, kind: input, shape index: {}]   ;;  %s1374_s1 = inlined_call_operand.vmem [shape: f32[32,1], index: 1, kind: input, shape index: {}]   ;;  %s1375_s2 = inlined_call_operand.vmem [shape: bf16[2,4,16,30], index: 2, kind: input, shape index: {}]   ;;  %s1376_s3 = inlined_call_operand.vmem [shape: bf16[2,32,20], index: 3, kind: output, shape index: {}]  }
   0x1 LB: > { %s988_s13 = sadd.s32 4294967295, %s1242_s12   ;;  %p992_p0 = scmp.ge.s32.totalorder %s1242_s12, 1  ;;  %s1242_s12 = sphi %s1268_s12, %s13_s12  }
   0x2   : > { %p137_p1 = scmp.lt.s32.totalorder %s1242_s12, 3 }
   0x4   : > { %p138_p2 = pnand %p992_p0, %p137_p1 }
   0x5   : > { %p161_p3 = scmp.lt.s32.totalorder (!%p138_p2), %s988_s13, 1  ;;  %v1217_v0 = vld [vmem:[%s1373_s0 + $0x10] sm:$0xff] (!%p138_p2)   ;;  %vm202_vm0 = vcmask (!%p138_p2), 130048   ;;  %v1221_v1 = vld [vmem:[%s1373_s0 + $0x40] sm:$0xff] (!%p138_p2)   ;;  %s1244_s22 = smov (!%p138_p2), 127   ;;  %v1218_v6 = vld [vmem:[%s1373_s0 + $0x18] sm:$0xff] (!%p138_p2)  }
   0x6   : > { %141 = sbr.rel (%p138_p2) target bundleno = 396 (0x18c), region = 32  ;;  %1116 = vmatprep.mubr.msk.bf16.mxu1 (!%p138_p2), %vm202_vm0, %v1217_v0  ;;  %1140 = vmatprep.mubr.msk.bf16.mxu0 (!%p138_p2), %vm202_vm0, %v1221_v1  ;;  %v1220_v7 = vld [vmem:[%s1373_s0] sm:$0xff] (!%p138_p2)   ;;  %s1245_s27 = smov (!%p138_p2), 123   ;;  %v1223_v8 = vld [vmem:[%s1373_s0 + $0x48] sm:$0xff] (!%p138_p2)   ;;  %v1225_v9 = vld [vmem:[%s1373_s0 + $0x50] sm:$0xff] (!%p138_p2)   ;;  %v1247_v13 = vmov (!%p138_p2), 0  }
   0x7   : > { %s1246_s5 = smov (!%p138_p2), 122   ;;  %v1222_v10 = vld [vmem:[%s1373_s0 + $0x8] sm:$0xff] (!%p138_p2)   ;;  %v1224_v11 = vld [vmem:[%s1373_s0 + $0x20] sm:$0xff] (!%p138_p2)   ;;  %1212 = vset.pattern.permute.xlu1 (!%p138_p2), %v1247_v13  ;;  %1213 = vset.pattern.permute.xlu0 (!%p138_p2), %v1247_v13  ;;  %v882_v15 = vld [vmem:[%s1374_s1 + $0x10] sm:$0xff] (!%p138_p2)  ;;  %vm928_vm1 = vcmask (!%p138_p2), 158720  }
   0x8   : > { %v880_v12 = vld [vmem:[%s1374_s1] sm:$0xff] (!%p138_p2)  ;;  %v881_v14 = vld [vmem:[%s1374_s1 + $0x8] sm:$0xff] (!%p138_p2)  ;;  %v883_v16 = vld [vmem:[%s1374_s1 + $0x18] sm:$0xff] (!%p138_p2) }
   0x9   : > { %v1227_v19 = vld [vmem:[%s1373_s0 + $0x58] sm:$0xff] (!%p138_p2)   ;;  %v1226_v20 = vld [vmem:[%s1373_s0 + $0x28] sm:$0xff] (!%p138_p2)   ;;  %v1228_v21 = vld [vmem:[%s1373_s0 + $0x30] sm:$0xff] (!%p138_p2)  }
   0xa   : > { %v1229_v23 = vld [vmem:[%s1373_s0 + $0x60] sm:$0xff] (!%p138_p2)   ;;  %v1231_v25 = vld [vmem:[%s1373_s0 + $0x68] sm:$0xff] (!%p138_p2)   ;;  %v1230_v26 = vld [vmem:[%s1373_s0 + $0x38] sm:$0xff] (!%p138_p2)  }
   0xb   : > { %v1232_v27 = vld [vmem:[%s1373_s0 + $0x70] sm:$0xff] (!%p138_p2)   ;;  %v1233_v29 = vld [vmem:[%s1373_s0 + $0x78] sm:$0xff] (!%p138_p2)   ;;  %v1234_v30 = vld [vmem:[%s1373_s0 + $0x80] sm:$0xff] (!%p138_p2)  }
   0xc   : > { %v1235_v31 = vld [vmem:[%s1373_s0 + $0x88] sm:$0xff] (!%p138_p2)  }
   0xd   : > { %s1378_s13 = smov (!%p161_p3, %s988_s13), 1 }
   0xe   : > { %s1081_s16 = sshll.u32 %s1378_s13, 5  ;;  %s1082_s15 = sshll.u32 %s1378_s13, 4 }
   0xf   : > { %s165_s21 = scalar_lea.vmem %s1375_s2, %s1081_s16  ;;  %s170_s18 = scalar_lea.vmem %s1376_s3, %s1082_s15 }
  0x10   : > { %v1214_v2 = vld [vmem:[%s165_s21 + $0x10] sm:$0xff]   ;;  %v1215_v3 = vld [vmem:[%s165_s21] sm:$0xff]   ;;  %v1216_v4 = vld [vmem:[%s165_s21 + $0x8] sm:$0xff]  }
  0x11   : > { %587 = vrot.lane.b32.xlu0 %v1214_v2, %s1244_s22  ;;  %344 = vrot.lane.b32.xlu1 %v1215_v3, %s1244_s22  ;;  %v1219_v5 = vld [vmem:[%s165_s21 + $0x18] sm:$0xff]  }
  0x12   : > { %1114 = vmatprep.subr.bf16.mxu1 %v1216_v4  ;;  %1138 = vmatprep.subr.bf16.mxu0 %v1219_v5 }
  0x13   : > { %1115 = vmatpush3.bf16.msra.mxu1 %v1216_v4  ;;  %1139 = vmatpush3.bf16.msra.mxu0 %v1219_v5 }
  0x14   : > { %1120 = vmatprep.subr.bf16.mxu1 %v1215_v3 }
  0x15   : > { %664 = vrot.lane.b32.xlu0 %v1215_v3, %s1245_s27  ;;  %741 = vrot.lane.b32.xlu1 %v1216_v4, %s1245_s27 }
  0x16   : > { %1117 = vmatmul.mubr.msk.bf16.vlgmr.msra.gmra.mrb[0].mxu1 %vm202_vm0, %v1218_v6  ;;  %1141 = vmatmul.mubr.msk.bf16.vlgmr.msra.gmra.mrb[0].mxu0 %vm202_vm0, %v1223_v8 }
  0x17   : > { %1121 = vmatpush3.bf16.msra.mxu1 %v1215_v3  ;;  %1122 = vmatprep.mubr.msk.bf16.mxu1 %vm202_vm0, %v1220_v7 }
  0x18   : > { %1146 = vmatprep.mubr.msk.bf16.mxu0 %vm202_vm0, %v1225_v9 }
  0x19   : > { %818 = vrot.lane.b32.xlu0 %v1215_v3, %s1246_s5  ;;  %886 = vperm.xlu1 %1212, %v880_v12  }
  0x1d   : > { %891 = vperm.xlu0 %1213, %v881_v14   ;;  %896 = vperm.xlu1 %1212, %v882_v15  }
  0x21   : > { %901 = vperm.xlu1 %1212, %v883_v16  }
  0x22   : > { %1123 = vmatmul.mubr.msk.bf16.vlgmr.msra.gmra.mrb[0].mxu1 %vm202_vm0, %v1222_v10 }
  0x23   : > { %1128 = vmatprep.mubr.msk.bf16.mxu1 %vm202_vm0, %v1224_v11 }
  0x83   : > { %v588_v17 = vpop.permute.xlu0 %587  ;;  %v345_v18 = vpop.permute.xlu1 %344 }
  0x84   : > { %1144 = vmatprep.subr.bf16.mxu0 %v588_v17  ;;  %1126 = vmatprep.subr.bf16.mxu1 %v345_v18 }
  0x85   : > { %1145 = vmatpush3.bf16.msra.mxu0 %v588_v17  ;;  %1127 = vmatpush3.bf16.msra.mxu1 %v345_v18 }
  0x86   : > { %1132 = vmatprep.subr.bf16.mxu1 %v1214_v2 }
  0x87   : > { %v665_v22 = vpop.permute.xlu0 %664  ;;  %v742_v24 = vpop.permute.xlu1 %741 }
  0x88   : > { %1147 = vmatmul.mubr.msk.bf16.vlgmr.msra.gmra.mrb[0].mxu0 %vm202_vm0, %v1227_v19  ;;  %1150 = vmatprep.subr.bf16.mxu0 %v665_v22 }
  0x89   : > { %1129 = vmatmul.mubr.msk.bf16.vlgmr.msra.gmra.mrb[0].mxu1 %vm202_vm0, %v1226_v20  ;;  %1151 = vmatpush3.bf16.msra.mxu0 %v665_v22 }
  0x8a   : > { %1133 = vmatpush3.bf16.msra.mxu1 %v1214_v2  ;;  %1134 = vmatprep.mubr.msk.bf16.mxu1 %vm202_vm0, %v1228_v21 }
  0x8b   : > { %1152 = vmatprep.mubr.msk.bf16.mxu0 %vm202_vm0, %v1229_v23  ;;  %1156 = vmatprep.subr.bf16.mxu0 %v742_v24  ;;  %v819_v28 = vpop.permute.xlu0 %818 }
  0x94   : > { %1153 = vmatmul.mubr.msk.bf16.vlgmr.msra.gmra.mrb[0].mxu0 %vm202_vm0, %v1231_v25 }
  0x95   : > { %1135 = vmatmul.mubr.msk.bf16.vlgmr.msra.gmra.mrb[0].mxu1 %vm202_vm0, %v1230_v26  ;;  %1157 = vmatpush3.bf16.msra.mxu0 %v742_v24 }
  0x96   : > { %1158 = vmatprep.mubr.msk.bf16.mxu0 %vm202_vm0, %v1232_v27  ;;  %1162 = vmatprep.subr.bf16.mxu0 %v819_v28 }
  0x98   : > { %v887_v36 = vpop.permute.xlu1 %886 }
  0x9c   : > { %v897_v37 = vpop.permute.xlu1 %896  ;;  %v892_v46 = vpop.permute.xlu0 %891 }
  0xa0   : > { %1159 = vmatmul.mubr.msk.bf16.vlgmr.msra.gmra.mrb[0].mxu0 %vm202_vm0, %v1233_v29  ;;  %v902_v49 = vpop.permute.xlu1 %901 }
  0xa1   : > { %1163 = vmatpush3.bf16.msra.mxu0 %v819_v28  ;;  %1164 = vmatprep.mubr.msk.bf16.mxu0 %vm202_vm0, %v1234_v30 }
  0xac   : > { %1165 = vmatmul.mubr.msk.bf16.vlgmr.msra.gmra.mrb[0].mxu0 %vm202_vm0, %v1235_v31 }
 0x168   : > { %v1136_v32 = vpop.f32.mrb[0].mxu1 }
 0x169   : > { %v470_v33 = vpop.f32.mrb[1].mxu1 }
 0x16a   : > { %v1137_v34 = vpop.f32.mrb[2].mxu1 }
 0x16b   : > { %v473_v35 = vpop.f32.mrb[3].mxu1 }
 0x17f   : > { %v1166_v38 = vpop.f32.mrb[0].mxu0 }
 0x180   : > { %v1168_v39 = vadd.f32 %v1166_v38, %v1136_v32  ;;  %v861_v40 = vpop.f32.mrb[1].mxu0 }
 0x181   : > { %v1169_v41 = vadd.f32 %v861_v40, %v470_v33  ;;  %v1167_v42 = vpop.f32.mrb[2].mxu0 }
 0x182   : > { %v906_v43 = vadd.f32 %v1168_v39, %v897_v37  ;;  %v1170_v44 = vadd.f32 %v1167_v42, %v1137_v34  ;;  %v864_v45 = vpop.f32.mrb[3].mxu0 }
 0x183   : > { %v904_v47 = vadd.f32 %v1169_v41, %v887_v36  ;;  %v1171_v48 = vadd.f32 %v864_v45, %v473_v35 }
 0x184   : > { %v910_v50 = vmax.f32 %v906_v43, 0.0  ;;  %v907_v51 = vadd.f32 %v1170_v44, %v902_v49 }
 0x185   : > { %v908_v52 = vmax.f32 %v904_v47, 0.0  ;;  %v905_v53 = vadd.f32 %v1171_v48, %v892_v46 }
 0x186   : > { %v1085_v54 = vpack.c.bf16 %v910_v50, %v910_v50  ;;  %v911_v55 = vmax.f32 %v907_v51, 0.0 }
 0x187   : > { %v1083_v56 = vpack.c.bf16 %v908_v52, %v908_v52  ;;  %v909_v57 = vmax.f32 %v905_v53, 0.0 }
 0x188   : > { %931 = vst.msk [vmem:[%s170_s18 + $0x8] sm:$0xf] %vm928_vm1, %v1085_v54  ;;  %v1086_v58 = vpack.c.bf16 %v911_v55, %v911_v55 }
 0x189   : > { %929 = vst.msk [vmem:[%s170_s18] sm:$0xf] %vm928_vm1, %v1083_v56  ;;  %v1084_v59 = vpack.c.bf16 %v909_v57, %v909_v57 }
 0x18a   : > { %932 = vst.msk [vmem:[%s170_s18 + $0xc] sm:$0xf] %vm928_vm1, %v1086_v58 }
 0x18b   : > { %930 = vst.msk [vmem:[%s170_s18 + $0x4] sm:$0xf] %vm928_vm1, %v1084_v59 }
 0x18c PF: > { %s13_s12 = sadd.s32 1, %s1242_s12  }
 0x18d   : > { %p10_p4 = scmp.ge.s32.totalorder %s13_s12, 4  }
 0x18f   :  { %12 = sbr.rel (!%p10_p4) target bundleno = 1 (0x1), region = 73 }

// kernel: backbone_with_fpn_forward.8
= control target key start
LH: loop header
LB: loop body
LE: loop exit
PB: predicated region body
PF: predicated region fallthrough
CT: control target
= control target key end

     0   :  { %s363_s12 = smov 0   ;;  %s386_s0 = inlined_call_operand.vmem [shape: bf16[1,8,32], index: 0, kind: input, shape index: {}]   ;;  %s387_s1 = inlined_call_operand.vmem [shape: f32[8,1], index: 1, kind: input, shape index: {}]   ;;  %s388_s2 = inlined_call_operand.vmem [shape: bf16[2,1,32,16], index: 2, kind: input, shape index: {}]   ;;  %s389_s3 = inlined_call_operand.vmem [shape: bf16[2,8,16], index: 3, kind: output, shape index: {}]  }
   0x1 LB: > { %s293_s13 = sadd.s32 4294967295, %s338_s12   ;;  %p297_p0 = scmp.ge.s32.totalorder %s338_s12, 1  ;;  %s338_s12 = sphi %s363_s12, %s13_s12  }
   0x2   : > { %p137_p1 = scmp.lt.s32.totalorder %s338_s12, 3 }
   0x4   : > { %p138_p2 = pnand %p297_p0, %p137_p1 }
   0x5   : > { %p160_p3 = scmp.lt.s32.totalorder (!%p138_p2), %s293_s13, 1  ;;  %v340_v0 = vmov (!%p138_p2), 0.0   ;;  %vm341_vm0 = vmmov (!%p138_p2), 0   ;;  %v175_v1 = vld [vmem:[%s387_s1] sm:$0xff] (!%p138_p2)  ;;  %v342_v2 = vmov (!%p138_p2), 0   ;;  %vm193_vm1 = vcmask (!%p138_p2), 261120  }
   0x6   : > { %141 = sbr.rel (%p138_p2) target bundleno = 241 (0xf1), region = 32  ;;  %310 = vmatprep.subr.bf16.mxu0 (!%p138_p2), %v340_v0  ;;  %314 = vmatprep.mubr.msk.bf16.mxu0 (!%p138_p2), %vm341_vm0, %v340_v0  ;;  %v174_v5 = vld [vmem:[%s386_s0] sm:$0xf] (!%p138_p2)  ;;  %vm238_vm2 = vcmask (!%p138_p2), 125952  }
   0x7   : > { %329 = vset.pattern.permute.xlu0 (!%p138_p2), %v342_v2 }
   0x8   : > { %178 = vperm.xlu0 (!%p138_p2), %329, %v175_v1  }
   0xd   : > { %s391_s13 = smov (!%p160_p3, %s293_s13), 1 }
   0xe   : > { %s306_s16 = sshll.u32 %s391_s13, 4  ;;  %s300_s22 = sshll.u32 %s391_s13, 2 }
   0xf   : > { %s164_s19 = scalar_lea.vmem %s388_s2, %s306_s16  ;;  %s168_s25 = scalar_lea.vmem %s389_s3, %s300_s22 }
  0x10   : > { %v330_v3 = vld [vmem:[%s164_s19] sm:$0xff]   ;;  %v331_v4 = vld [vmem:[%s164_s19 + $0x8] sm:$0xff]  }
  0x11   : > { %311 = vmatpush3.bf16.msra.mxu0 %v330_v3 }
  0x12   : > { %312 = vmatprep.subr.bf16.mxu0 %v340_v0 }
  0x15   : > { %313 = vmatpush3.bf16.msra.mxu0 %v331_v4 }
  0x18   : > { %315 = vmatmul.mubr.msk.bf16.vlgmr.msra.gmra.mrb[0].mxu0 %vm193_vm1, %v174_v5 }
  0x87   : > { %v179_v6 = vpop.permute.xlu0 %178 }
  0xeb   : > { %v231_v7 = vpop.f32.mrb[0].mxu0 }
  0xec   : > { %v232_v8 = vadd.f32 %v231_v7, %v179_v6  ;;  %v316_v9 = vpop.f32.mrb[1].mxu0 }
  0xed   : > { %v234_v10 = vpop.f32.mrb[2].mxu0 }
  0xee   : > { %v237_v11 = vpack.c.bf16 %v232_v8, %v232_v8  ;;  %v317_v12 = vpop.f32.mrb[3].mxu0 }
  0xf0   : > { %239 = vst.msk [vmem:[%s168_s25] sm:$0xf] %vm238_vm2, %v237_v11 }
  0xf1 PF: > { %s13_s12 = sadd.s32 1, %s338_s12  }
  0xf2   : > { %p10_p4 = scmp.ge.s32.totalorder %s13_s12, 4  }
  0xf4   :  { %12 = sbr.rel (!%p10_p4) target bundleno = 1 (0x1), region = 62 }

// kernel: backbone_with_fpn_forward.10
= control target key start
LH: loop header
LB: loop body
LE: loop exit
PB: predicated region body
PF: predicated region fallthrough
CT: control target
= control target key end

     0   :  { %s415_s15 = smov 0   ;;  %s441_s0 = inlined_call_operand.vmem [shape: bf16[1,8,16], index: 0, kind: input, shape index: {}]   ;;  %s442_s1 = inlined_call_operand.vmem [shape: f32[8,1], index: 1, kind: input, shape index: {}]   ;;  %s443_s2 = inlined_call_operand.vmem [shape: bf16[2,1,16,64], index: 2, kind: input, shape index: {}]   ;;  %s444_s3 = inlined_call_operand.vmem [shape: bf16[2,8,64], index: 3, kind: input, shape index: {}]   ;;  %s445_s4 = inlined_call_operand.vmem [shape: bf16[2,8,64], index: 4, kind: output, shape index: {}]  }
   0x1 LB: > { %s344_s16 = sadd.s32 4294967295, %s385_s15   ;;  %p348_p0 = scmp.ge.s32.totalorder %s385_s15, 1  ;;  %s385_s15 = sphi %s415_s15, %s14_s15  }
   0x2   : > { %p171_p1 = scmp.lt.s32.totalorder %s385_s15, 3 }
   0x4   : > { %p172_p2 = pnand %p348_p0, %p171_p1 }
   0x5   : > { %p200_p3 = scmp.lt.s32.totalorder (!%p172_p2), %s344_s16, 1  ;;  %v387_v0 = vmov (!%p172_p2), 0.0   ;;  %vm388_vm0 = vmmov (!%p172_p2), 0   ;;  %v219_v1 = vld [vmem:[%s442_s1] sm:$0xff] (!%p172_p2)  ;;  %v389_v2 = vmov (!%p172_p2), 0   ;;  %vm231_vm1 = vcmask (!%p172_p2), 130048  }
   0x6   : > { %175 = sbr.rel (%p172_p2) target bundleno = 239 (0xef), region = 36  ;;  %360 = vmatprep.subr.bf16.mxu0 (!%p172_p2), %v387_v0  ;;  %362 = vmatprep.mubr.msk.bf16.mxu0 (!%p172_p2), %vm388_vm0, %v387_v0  ;;  %v216_v4 = vld [vmem:[%s441_s0] sm:$0xf] (!%p172_p2)  ;;  %vm277_vm2 = vcmask (!%p172_p2), 519168  }
   0x7   : > { %377 = vset.pattern.permute.xlu0 (!%p172_p2), %v389_v2 }
   0x8   : > { %222 = vperm.xlu0 (!%p172_p2), %377, %v219_v1  }
   0xd   : > { %s447_s16 = smov (!%p200_p3, %s344_s16), 1 }
   0xe   : > { %s357_s19 = sshll.u32 %s447_s16, 3  ;;  %s351_s25 = sshll.u32 %s447_s16, 2 }
   0xf   : > { %s204_s22 = scalar_lea.vmem %s443_s2, %s357_s19  ;;  %s208_s28 = scalar_lea.vmem %s444_s3, %s351_s25 }
  0x10   : > { %v378_v3 = vld [vmem:[%s204_s22] sm:$0xff]   ;;  %s212_s5 = scalar_lea.vmem %s445_s4, %s351_s25 }
  0x11   : > { %361 = vmatpush3.bf16.msra.mxu0 %v378_v3  ;;  %v217_v5 = vld [vmem:[%s208_s28] sm:$0xf] }
  0x12   : > { %v218_v7 = vunpack.c.l.bf16 %v217_v5 }
  0x14   : > { %363 = vmatmul.mubr.msk.bf16.vlgmr.msra.gmra.mrb[0].mxu0 %vm231_vm1, %v216_v4 }
  0x87   : > { %v223_v6 = vpop.permute.xlu0 %222 }
  0xe7   : > { %v269_v8 = vpop.f32.mrb[0].mxu0 }
  0xe8   : > { %v270_v9 = vadd.f32 %v269_v8, %v223_v6  ;;  %v364_v10 = vpop.f32.mrb[1].mxu0 }
  0xe9   : > { %v272_v11 = vpop.f32.mrb[2].mxu0 }
  0xea   : > { %v275_v12 = vadd.f32 %v270_v9, %v218_v7  ;;  %v365_v13 = vpop.f32.mrb[3].mxu0 }
  0xec   : > { %v276_v14 = vpack.c.bf16 %v275_v12, %v275_v12 }
  0xee   : > { %278 = vst.msk [vmem:[%s212_s5] sm:$0xf] %vm277_vm2, %v276_v14 }
  0xef PF: > { %s14_s15 = sadd.s32 1, %s385_s15  }
  0xf0   : > { %p11_p4 = scmp.ge.s32.totalorder %s14_s15, 4  }
  0xf2   :  { %13 = sbr.rel (!%p11_p4) target bundleno = 1 (0x1), region = 69 }

// kernel: backbone_with_fpn_forward.11
= control target key start
LH: loop header
LB: loop body
LE: loop exit
PB: predicated region body
PF: predicated region fallthrough
CT: control target
= control target key end

     0   :  { %s848_s12 = smov 0   ;;  %s944_s0 = inlined_call_operand.vmem [shape: bf16[9,8,8], index: 0, kind: input, shape index: {}]   ;;  %s945_s1 = inlined_call_operand.vmem [shape: f32[8,1], index: 1, kind: input, shape index: {}]   ;;  %s946_s2 = inlined_call_operand.vmem [shape: bf16[2,1,8,110], index: 2, kind: input, shape index: {}]   ;;  %s947_s3 = inlined_call_operand.vmem [shape: f32[2,8,80], index: 3, kind: output, shape index: {}]  }
   0x1 LB: > { %s689_s13 = sadd.s32 4294967295, %s815_s12   ;;  %p693_p0 = scmp.ge.s32.totalorder %s815_s12, 1  ;;  %s815_s12 = sphi %s848_s12, %s13_s12  }
   0x2   : > { %p136_p1 = scmp.lt.s32.totalorder %s815_s12, 3 }
   0x4   : > { %p137_p2 = pnand %p693_p0, %p136_p1 }
   0x5   : > { %p158_p3 = scmp.lt.s32.totalorder (!%p137_p2), %s689_s13, 1  ;;  %v817_v0 = vmov (!%p137_p2), 0.0   ;;  %vm818_vm0 = vmmov (!%p137_p2), 0   ;;  %vm180_vm1 = vcmask (!%p137_p2), 1043456   ;;  %vm176_vm2 = vcmask (!%p137_p2), 64512   ;;  %s819_s20 = smov (!%p137_p2), 127  }
   0x6   : > { %140 = sbr.rel (%p137_p2) target bundleno = 387 (0x183), region = 32  ;;  %734 = vmatprep.subr.bf16.mxu0 (!%p137_p2), %v817_v0  ;;  %740 = vmatprep.subr.bf16.mxu1 (!%p137_p2), %v817_v0  ;;  %v168_v4 = vld [vmem:[%s944_s0] sm:$0xf] (!%p137_p2)  ;;  %s820_s21 = smov (!%p137_p2), 118   ;;  %v827_v6 = vmov (!%p137_p2), 0   ;;  %vm634_vm3 = vcmask (!%p137_p2), 654336  }
   0x7   : > { %736 = vmatprep.mubr.msk.bf16.mxu0 (!%p137_p2), %vm818_vm0, %v817_v0  ;;  %742 = vmatprep.mubr.msk.bf16.mxu1 (!%p137_p2), %vm818_vm0, %v817_v0  ;;  %s821_s22 = smov (!%p137_p2), 126   ;;  %s822_s23 = smov (!%p137_p2), 117   ;;  %v627_v5 = vld [vmem:[%s945_s1] sm:$0xff] (!%p137_p2)  ;;  %v702_v12 = vld [vmem:[%s944_s0 + $0xc] sm:$0xf] (!%p137_p2) }
   0x8   : > { %s823_s24 = smov (!%p137_p2), 116   ;;  %s824_s25 = smov (!%p137_p2), 108   ;;  %807 = vset.pattern.permute.xlu0 (!%p137_p2), %v827_v6  ;;  %v696_v11 = vld [vmem:[%s944_s0 + $0x4] sm:$0xf] (!%p137_p2)  ;;  %v700_v18 = vld [vmem:[%s944_s0 + $0x8] sm:$0xf] (!%p137_p2) }
   0x9   : > { %s825_s26 = smov (!%p137_p2), 107   ;;  %s826_s27 = smov (!%p137_p2), 106   ;;  %v706_v19 = vld [vmem:[%s944_s0 + $0x14] sm:$0xf] (!%p137_p2)  ;;  %v704_v24 = vld [vmem:[%s944_s0 + $0x10] sm:$0xf] (!%p137_p2) }
   0xa   : > { %v710_v25 = vld [vmem:[%s944_s0 + $0x1c] sm:$0xf] (!%p137_p2)  ;;  %v708_v28 = vld [vmem:[%s944_s0 + $0x18] sm:$0xf] (!%p137_p2)  ;;  %v712_v30 = vld [vmem:[%s944_s0 + $0x20] sm:$0xf] (!%p137_p2) }
   0xd   : > { %s949_s13 = smov (!%p158_p3, %s689_s13), 1 }
   0xe   : > { %s694_s14 = sshll.u32 %s949_s13, 2 }
   0xf   : > { %s161_s17 = scalar_lea.vmem %s946_s2, %s694_s14 }
  0x10   : > { %v167_v1 = vld [vmem:[%s161_s17] sm:$0xf] }
  0x11   : > { %v697_v2 = vcombine.low %v167_v1, %v167_v1  ;;  %v228_v3 = vsel %vm180_vm1, %v167_v1, 0 }
  0x12   : > { %741 = vmatpush3.bf16.msra.mxu1 %v228_v3 }
  0x13   : > { %174 = vrot.lane.b32.xlu0 %v697_v2, %s819_s20  ;;  %323 = vrot.lane.b32.xlu1 %v697_v2, %s820_s21  ;;  %s695_s21 = sshll.u32 %s949_s13, 3 }
  0x14   : > { %752 = vmatprep.subr.bf16.mxu1 %v817_v0 }
  0x15   : > { %743 = vmatmul.mubr.msk.bf16.vlgmr.msra.gmra.mrb[0].mxu1 %vm176_vm2, %v168_v4 }
  0x16   : > { %754 = vmatprep.mubr.msk.bf16.mxu1 %vm818_vm0, %v817_v0 }
  0x17   : > { %272 = vrot.lane.b32.xlu0 %v697_v2, %s821_s22  ;;  %374 = vrot.lane.b32.xlu1 %v697_v2, %s822_s23 }
  0x1b   : > { %425 = vrot.lane.b32.xlu0 %v697_v2, %s823_s24  ;;  %476 = vrot.lane.b32.xlu1 %v697_v2, %s824_s25  ;;  %s165_s24 = scalar_lea.vmem %s947_s3, %s695_s21 }
  0x1f   : > { %527 = vrot.lane.b32.xlu0 %v697_v2, %s825_s26  ;;  %578 = vrot.lane.b32.xlu1 %v697_v2, %s826_s27 }
  0x23   : > { %630 = vperm.xlu0 %807, %v627_v5  }
  0x85   : > { %v175_v7 = vpop.permute.xlu0 %174  ;;  %v324_v8 = vpop.permute.xlu1 %323 }
  0x86   : > { %v182_v9 = vsel %vm180_vm1, %v175_v7, 0  ;;  %v329_v10 = vsel %vm180_vm1, %v324_v8, 0 }
  0x87   : > { %735 = vmatpush3.bf16.msra.mxu0 %v182_v9  ;;  %753 = vmatpush3.bf16.msra.mxu1 %v329_v10 }
  0x88   : > { %746 = vmatprep.subr.bf16.mxu0 %v817_v0  ;;  %764 = vmatprep.subr.bf16.mxu1 %v817_v0 }
  0x89   : > { %v273_v13 = vpop.permute.xlu0 %272  ;;  %v375_v15 = vpop.permute.xlu1 %374 }
  0x8a   : > { %v278_v14 = vsel %vm180_vm1, %v273_v13, 0  ;;  %737 = vmatmul.mubr.msk.bf16.vlgmr.msra.gmra.mrb[0].mxu0 %vm176_vm2, %v696_v11  ;;  %755 = vmatmul.mubr.msk.bf16.vlgmr.msra.gmra.mrb[4].mxu1 %vm176_vm2, %v702_v12  ;;  %v380_v20 = vsel %vm180_vm1, %v375_v15, 0 }
  0x8b   : > { %747 = vmatpush3.bf16.msra.mxu0 %v278_v14  ;;  %748 = vmatprep.mubr.msk.bf16.mxu0 %vm818_vm0, %v817_v0 }
  0x8c   : > { %758 = vmatprep.subr.bf16.mxu0 %v817_v0  ;;  %766 = vmatprep.mubr.msk.bf16.mxu1 %vm818_vm0, %v817_v0 }
  0x8d   : > { %v426_v16 = vpop.permute.xlu0 %425  ;;  %v477_v23 = vpop.permute.xlu1 %476 }
  0x8e   : > { %v431_v17 = vsel %vm180_vm1, %v426_v16, 0  ;;  %v482_v26 = vsel %vm180_vm1, %v477_v23, 0 }
  0x8f   : > { %765 = vmatpush3.bf16.msra.mxu1 %v431_v17 }
  0x90   : > { %776 = vmatprep.subr.bf16.mxu1 %v817_v0 }
  0x91   : > { %v528_v21 = vpop.permute.xlu0 %527  ;;  %v579_v27 = vpop.permute.xlu1 %578 }
  0x92   : > { %749 = vmatmul.mubr.msk.bf16.vlgmr.msra.gmra.mrb[4].mxu0 %vm176_vm2, %v700_v18  ;;  %767 = vmatmul.mubr.msk.bf16.vlgmr.msra.gmra.mrb[8].mxu1 %vm176_vm2, %v706_v19  ;;  %v533_v22 = vsel %vm180_vm1, %v528_v21, 0  ;;  %v584_v29 = vsel %vm180_vm1, %v579_v27, 0 }
  0x93   : > { %759 = vmatpush3.bf16.msra.mxu0 %v380_v20  ;;  %760 = vmatprep.mubr.msk.bf16.mxu0 %vm818_vm0, %v817_v0 }
  0x94   : > { %770 = vmatprep.subr.bf16.mxu0 %v817_v0  ;;  %777 = vmatpush3.bf16.msra.mxu1 %v533_v22 }
  0x95   : > { %778 = vmatprep.mubr.msk.bf16.mxu1 %vm818_vm0, %v817_v0 }
  0x9a   : > { %761 = vmatmul.mubr.msk.bf16.vlgmr.msra.gmra.mrb[8].mxu0 %vm176_vm2, %v704_v24  ;;  %779 = vmatmul.mubr.msk.bf16.vlgmr.msra.gmra.mrb[12].mxu1 %vm176_vm2, %v710_v25 }
  0x9b   : > { %771 = vmatpush3.bf16.msra.mxu0 %v482_v26  ;;  %772 = vmatprep.mubr.msk.bf16.mxu0 %vm818_vm0, %v817_v0 }
  0x9c   : > { %782 = vmatprep.subr.bf16.mxu0 %v817_v0 }
  0xa2   : > { %773 = vmatmul.mubr.msk.bf16.vlgmr.msra.gmra.mrb[12].mxu0 %vm176_vm2, %v708_v28  ;;  %v631_v7 = vpop.permute.xlu0 %630 }
  0xa3   : > { %783 = vmatpush3.bf16.msra.mxu0 %v584_v29  ;;  %784 = vmatprep.mubr.msk.bf16.mxu0 %vm818_vm0, %v817_v0 }
  0xaa   : > { %785 = vmatmul.mubr.msk.bf16.vlgmr.msra.gmra.mrb[16].mxu0 %vm176_vm2, %v712_v30 }
  0xe8   : > { %v264_v31 = vpop.f32.mrb[0].mxu1 }
  0xe9   : > { %v744_v32 = vpop.f32.mrb[1].mxu1 }
  0xea   : > { %v267_v33 = vpop.f32.mrb[2].mxu1 }
  0xeb   : > { %v745_v34 = vpop.f32.mrb[3].mxu1 }
 0x15d   : > { %v218_v35 = vpop.f32.mrb[0].mxu0  ;;  %v365_v36 = vpop.f32.mrb[4].mxu1 }
 0x15e   : > { %v738_v37 = vpop.f32.mrb[1].mxu0  ;;  %v265_v38 = vadd.f32 %v264_v31, %v218_v35  ;;  %v756_v39 = vpop.f32.mrb[5].mxu1 }
 0x15f   : > { %v221_v40 = vpop.f32.mrb[2].mxu0  ;;  %v368_v41 = vpop.f32.mrb[6].mxu1 }
 0x160   : > { %v739_v42 = vpop.f32.mrb[3].mxu0  ;;  %v757_v43 = vpop.f32.mrb[7].mxu1 }
 0x165   : > { %v314_v44 = vpop.f32.mrb[4].mxu0  ;;  %v467_v45 = vpop.f32.mrb[8].mxu1 }
 0x166   : > { %v320_v46 = vadd.f32 %v314_v44, %v265_v38  ;;  %v750_v47 = vpop.f32.mrb[5].mxu0  ;;  %v768_v48 = vpop.f32.mrb[9].mxu1 }
 0x167   : > { %v317_v49 = vpop.f32.mrb[6].mxu0  ;;  %v470_v50 = vpop.f32.mrb[10].mxu1 }
 0x168   : > { %v371_v51 = vadd.f32 %v365_v36, %v320_v46  ;;  %v751_v52 = vpop.f32.mrb[7].mxu0  ;;  %v769_v53 = vpop.f32.mrb[11].mxu1 }
 0x16d   : > { %v416_v54 = vpop.f32.mrb[8].mxu0  ;;  %v569_v55 = vpop.f32.mrb[12].mxu1 }
 0x16e   : > { %v422_v56 = vadd.f32 %v416_v54, %v371_v51  ;;  %v762_v57 = vpop.f32.mrb[9].mxu0  ;;  %v780_v58 = vpop.f32.mrb[13].mxu1 }
 0x16f   : > { %v419_v59 = vpop.f32.mrb[10].mxu0  ;;  %v572_v60 = vpop.f32.mrb[14].mxu1 }
 0x170   : > { %v473_v61 = vadd.f32 %v467_v45, %v422_v56  ;;  %v763_v62 = vpop.f32.mrb[11].mxu0  ;;  %v781_v63 = vpop.f32.mrb[15].mxu1 }
 0x175   : > { %v518_v0 = vpop.f32.mrb[12].mxu0 }
 0x176   : > { %v524_v1 = vadd.f32 %v518_v0, %v473_v61  ;;  %v774_v2 = vpop.f32.mrb[13].mxu0 }
 0x177   : > { %v521_v3 = vpop.f32.mrb[14].mxu0 }
 0x178   : > { %v575_v4 = vadd.f32 %v569_v55, %v524_v1  ;;  %v775_v5 = vpop.f32.mrb[15].mxu0 }
 0x17d   : > { %v620_v6 = vpop.f32.mrb[16].mxu0 }
 0x17e   : > { %v626_v8 = vadd.f32 %v620_v6, %v575_v4  ;;  %v786_v9 = vpop.f32.mrb[17].mxu0 }
 0x17f   : > { %v623_v10 = vpop.f32.mrb[18].mxu0 }
 0x180   : > { %v633_v11 = vadd.f32 %v631_v7, %v626_v8  ;;  %v787_v12 = vpop.f32.mrb[19].mxu0 }
 0x182   : > { %635 = vst.msk [vmem:[%s165_s24] sm:$0xff] %vm634_vm3, %v633_v11 }
 0x183 PF: > { %s13_s12 = sadd.s32 1, %s815_s12  }
 0x184   : > { %p10_p4 = scmp.ge.s32.totalorder %s13_s12, 4  }
 0x186   :  { %12 = sbr.rel (!%p10_p4) target bundleno = 1 (0x1), region = 70 }

// kernel: backbone_with_fpn_forward.9
= control target key start
LH: loop header
LB: loop body
LE: loop exit
PB: predicated region body
PF: predicated region fallthrough
CT: control target
= control target key end

     0   :  { %s848_s12 = smov 0   ;;  %s944_s0 = inlined_call_operand.vmem [shape: bf16[9,8,8], index: 0, kind: input, shape index: {}]   ;;  %s945_s1 = inlined_call_operand.vmem [shape: f32[8,1], index: 1, kind: input, shape index: {}]   ;;  %s946_s2 = inlined_call_operand.vmem [shape: bf16[2,1,8,42], index: 2, kind: input, shape index: {}]   ;;  %s947_s3 = inlined_call_operand.vmem [shape: f32[2,8,24], index: 3, kind: output, shape index: {}]  }
   0x1 LB: > { %s689_s13 = sadd.s32 4294967295, %s815_s12   ;;  %p693_p0 = scmp.ge.s32.totalorder %s815_s12, 1  ;;  %s815_s12 = sphi %s848_s12, %s13_s12  }
   0x2   : > { %p136_p1 = scmp.lt.s32.totalorder %s815_s12, 3 }
   0x4   : > { %p137_p2 = pnand %p693_p0, %p136_p1 }
   0x5   : > { %p158_p3 = scmp.lt.s32.totalorder (!%p137_p2), %s689_s13, 1  ;;  %v817_v0 = vmov (!%p137_p2), 0.0   ;;  %vm818_vm0 = vmmov (!%p137_p2), 0   ;;  %vm180_vm1 = vcmask (!%p137_p2), 1043456   ;;  %vm176_vm2 = vcmask (!%p137_p2), 64512   ;;  %s819_s20 = smov (!%p137_p2), 127  }
   0x6   : > { %140 = sbr.rel (%p137_p2) target bundleno = 387 (0x183), region = 32  ;;  %734 = vmatprep.subr.bf16.mxu0 (!%p137_p2), %v817_v0  ;;  %740 = vmatprep.subr.bf16.mxu1 (!%p137_p2), %v817_v0  ;;  %v168_v4 = vld [vmem:[%s944_s0] sm:$0xf] (!%p137_p2)  ;;  %s820_s21 = smov (!%p137_p2), 122   ;;  %v827_v6 = vmov (!%p137_p2), 0   ;;  %vm634_vm3 = vcmask (!%p137_p2), 195584  }
   0x7   : > { %736 = vmatprep.mubr.msk.bf16.mxu0 (!%p137_p2), %vm818_vm0, %v817_v0  ;;  %742 = vmatprep.mubr.msk.bf16.mxu1 (!%p137_p2), %vm818_vm0, %v817_v0  ;;  %s821_s22 = smov (!%p137_p2), 126   ;;  %s822_s23 = smov (!%p137_p2), 121   ;;  %v627_v5 = vld [vmem:[%s945_s1] sm:$0xff] (!%p137_p2)  ;;  %v702_v12 = vld [vmem:[%s944_s0 + $0xc] sm:$0xf] (!%p137_p2) }
   0x8   : > { %s823_s24 = smov (!%p137_p2), 120   ;;  %s824_s25 = smov (!%p137_p2), 116   ;;  %807 = vset.pattern.permute.xlu0 (!%p137_p2), %v827_v6  ;;  %v696_v11 = vld [vmem:[%s944_s0 + $0x4] sm:$0xf] (!%p137_p2)  ;;  %v700_v18 = vld [vmem:[%s944_s0 + $0x8] sm:$0xf] (!%p137_p2) }
   0x9   : > { %s825_s26 = smov (!%p137_p2), 115   ;;  %s826_s27 = smov (!%p137_p2), 114   ;;  %v706_v19 = vld [vmem:[%s944_s0 + $0x14] sm:$0xf] (!%p137_p2)  ;;  %v704_v24 = vld [vmem:[%s944_s0 + $0x10] sm:$0xf] (!%p137_p2) }
   0xa   : > { %v710_v25 = vld [vmem:[%s944_s0 + $0x1c] sm:$0xf] (!%p137_p2)  ;;  %v708_v28 = vld [vmem:[%s944_s0 + $0x18] sm:$0xf] (!%p137_p2)  ;;  %v712_v30 = vld [vmem:[%s944_s0 + $0x20] sm:$0xf] (!%p137_p2) }
   0xd   : > { %s949_s13 = smov (!%p158_p3, %s689_s13), 1 }
   0xe   : > { %s694_s14 = sshll.u32 %s949_s13, 2 }
   0xf   : > { %s161_s17 = scalar_lea.vmem %s946_s2, %s694_s14 }
  0x10   : > { %v167_v1 = vld [vmem:[%s161_s17] sm:$0xf] }
  0x11   : > { %v697_v2 = vcombine.low %v167_v1, %v167_v1  ;;  %v228_v3 = vsel %vm180_vm1, %v167_v1, 0 }
  0x12   : > { %741 = vmatpush3.bf16.msra.mxu1 %v228_v3 }
  0x13   : > { %174 = vrot.lane.b32.xlu0 %v697_v2, %s819_s20  ;;  %323 = vrot.lane.b32.xlu1 %v697_v2, %s820_s21  ;;  %s695_s21 = sshll.u32 %s949_s13, 3 }
  0x14   : > { %752 = vmatprep.subr.bf16.mxu1 %v817_v0 }
  0x15   : > { %743 = vmatmul.mubr.msk.bf16.vlgmr.msra.gmra.mrb[0].mxu1 %vm176_vm2, %v168_v4 }
  0x16   : > { %754 = vmatprep.mubr.msk.bf16.mxu1 %vm818_vm0, %v817_v0 }
  0x17   : > { %272 = vrot.lane.b32.xlu0 %v697_v2, %s821_s22  ;;  %374 = vrot.lane.b32.xlu1 %v697_v2, %s822_s23 }
  0x1b   : > { %425 = vrot.lane.b32.xlu0 %v697_v2, %s823_s24  ;;  %476 = vrot.lane.b32.xlu1 %v697_v2, %s824_s25  ;;  %s165_s24 = scalar_lea.vmem %s947_s3, %s695_s21 }
  0x1f   : > { %527 = vrot.lane.b32.xlu0 %v697_v2, %s825_s26  ;;  %578 = vrot.lane.b32.xlu1 %v697_v2, %s826_s27 }
  0x23   : > { %630 = vperm.xlu0 %807, %v627_v5  }
  0x85   : > { %v175_v7 = vpop.permute.xlu0 %174  ;;  %v324_v8 = vpop.permute.xlu1 %323 }
  0x86   : > { %v182_v9 = vsel %vm180_vm1, %v175_v7, 0  ;;  %v329_v10 = vsel %vm180_vm1, %v324_v8, 0 }
  0x87   : > { %735 = vmatpush3.bf16.msra.mxu0 %v182_v9  ;;  %753 = vmatpush3.bf16.msra.mxu1 %v329_v10 }
  0x88   : > { %746 = vmatprep.subr.bf16.mxu0 %v817_v0  ;;  %764 = vmatprep.subr.bf16.mxu1 %v817_v0 }
  0x89   : > { %v273_v13 = vpop.permute.xlu0 %272  ;;  %v375_v15 = vpop.permute.xlu1 %374 }
  0x8a   : > { %v278_v14 = vsel %vm180_vm1, %v273_v13, 0  ;;  %737 = vmatmul.mubr.msk.bf16.vlgmr.msra.gmra.mrb[0].mxu0 %vm176_vm2, %v696_v11  ;;  %755 = vmatmul.mubr.msk.bf16.vlgmr.msra.gmra.mrb[4].mxu1 %vm176_vm2, %v702_v12  ;;  %v380_v20 = vsel %vm180_vm1, %v375_v15, 0 }
  0x8b   : > { %747 = vmatpush3.bf16.msra.mxu0 %v278_v14  ;;  %748 = vmatprep.mubr.msk.bf16.mxu0 %vm818_vm0, %v817_v0 }
  0x8c   : > { %758 = vmatprep.subr.bf16.mxu0 %v817_v0  ;;  %766 = vmatprep.mubr.msk.bf16.mxu1 %vm818_vm0, %v817_v0 }
  0x8d   : > { %v426_v16 = vpop.permute.xlu0 %425  ;;  %v477_v23 = vpop.permute.xlu1 %476 }
  0x8e   : > { %v431_v17 = vsel %vm180_vm1, %v426_v16, 0  ;;  %v482_v26 = vsel %vm180_vm1, %v477_v23, 0 }
  0x8f   : > { %765 = vmatpush3.bf16.msra.mxu1 %v431_v17 }
  0x90   : > { %776 = vmatprep.subr.bf16.mxu1 %v817_v0 }
  0x91   : > { %v528_v21 = vpop.permute.xlu0 %527  ;;  %v579_v27 = vpop.permute.xlu1 %578 }
  0x92   : > { %749 = vmatmul.mubr.msk.bf16.vlgmr.msra.gmra.mrb[4].mxu0 %vm176_vm2, %v700_v18  ;;  %767 = vmatmul.mubr.msk.bf16.vlgmr.msra.gmra.mrb[8].mxu1 %vm176_vm2, %v706_v19  ;;  %v533_v22 = vsel %vm180_vm1, %v528_v21, 0  ;;  %v584_v29 = vsel %vm180_vm1, %v579_v27, 0 }
  0x93   : > { %759 = vmatpush3.bf16.msra.mxu0 %v380_v20  ;;  %760 = vmatprep.mubr.msk.bf16.mxu0 %vm818_vm0, %v817_v0 }
  0x94   : > { %770 = vmatprep.subr.bf16.mxu0 %v817_v0  ;;  %777 = vmatpush3.bf16.msra.mxu1 %v533_v22 }
  0x95   : > { %778 = vmatprep.mubr.msk.bf16.mxu1 %vm818_vm0, %v817_v0 }
  0x9a   : > { %761 = vmatmul.mubr.msk.bf16.vlgmr.msra.gmra.mrb[8].mxu0 %vm176_vm2, %v704_v24  ;;  %779 = vmatmul.mubr.msk.bf16.vlgmr.msra.gmra.mrb[12].mxu1 %vm176_vm2, %v710_v25 }
  0x9b   : > { %771 = vmatpush3.bf16.msra.mxu0 %v482_v26  ;;  %772 = vmatprep.mubr.msk.bf16.mxu0 %vm818_vm0, %v817_v0 }
  0x9c   : > { %782 = vmatprep.subr.bf16.mxu0 %v817_v0 }
  0xa2   : > { %773 = vmatmul.mubr.msk.bf16.vlgmr.msra.gmra.mrb[12].mxu0 %vm176_vm2, %v708_v28  ;;  %v631_v7 = vpop.permute.xlu0 %630 }
  0xa3   : > { %783 = vmatpush3.bf16.msra.mxu0 %v584_v29  ;;  %784 = vmatprep.mubr.msk.bf16.mxu0 %vm818_vm0, %v817_v0 }
  0xaa   : > { %785 = vmatmul.mubr.msk.bf16.vlgmr.msra.gmra.mrb[16].mxu0 %vm176_vm2, %v712_v30 }
  0xe8   : > { %v264_v31 = vpop.f32.mrb[0].mxu1 }
  0xe9   : > { %v744_v32 = vpop.f32.mrb[1].mxu1 }
  0xea   : > { %v267_v33 = vpop.f32.mrb[2].mxu1 }
  0xeb   : > { %v745_v34 = vpop.f32.mrb[3].mxu1 }
 0x15d   : > { %v218_v35 = vpop.f32.mrb[0].mxu0  ;;  %v365_v36 = vpop.f32.mrb[4].mxu1 }
 0x15e   : > { %v738_v37 = vpop.f32.mrb[1].mxu0  ;;  %v265_v38 = vadd.f32 %v264_v31, %v218_v35  ;;  %v756_v39 = vpop.f32.mrb[5].mxu1 }
 0x15f   : > { %v221_v40 = vpop.f32.mrb[2].mxu0  ;;  %v368_v41 = vpop.f32.mrb[6].mxu1 }
 0x160   : > { %v739_v42 = vpop.f32.mrb[3].mxu0  ;;  %v757_v43 = vpop.f32.mrb[7].mxu1 }
 0x165   : > { %v314_v44 = vpop.f32.mrb[4].mxu0  ;;  %v467_v45 = vpop.f32.mrb[8].mxu1 }
 0x166   : > { %v320_v46 = vadd.f32 %v314_v44, %v265_v38  ;;  %v750_v47 = vpop.f32.mrb[5].mxu0  ;;  %v768_v48 = vpop.f32.mrb[9].mxu1 }
 0x167   : > { %v317_v49 = vpop.f32.mrb[6].mxu0  ;;  %v470_v50 = vpop.f32.mrb[10].mxu1 }
 0x168   : > { %v371_v51 = vadd.f32 %v365_v36, %v320_v46  ;;  %v751_v52 = vpop.f32.mrb[7].mxu0  ;;  %v769_v53 = vpop.f32.mrb[11].mxu1 }
 0x16d   : > { %v416_v54 = vpop.f32.mrb[8].mxu0  ;;  %v569_v55 = vpop.f32.mrb[12].mxu1 }
 0x16e   : > { %v422_v56 = vadd.f32 %v416_v54, %v371_v51  ;;  %v762_v57 = vpop.f32.mrb[9].mxu0  ;;  %v780_v58 = vpop.f32.mrb[13].mxu1 }
 0x16f   : > { %v419_v59 = vpop.f32.mrb[10].mxu0  ;;  %v572_v60 = vpop.f32.mrb[14].mxu1 }
 0x170   : > { %v473_v61 = vadd.f32 %v467_v45, %v422_v56  ;;  %v763_v62 = vpop.f32.mrb[11].mxu0  ;;  %v781_v63 = vpop.f32.mrb[15].mxu1 }
 0x175   : > { %v518_v0 = vpop.f32.mrb[12].mxu0 }
 0x176   : > { %v524_v1 = vadd.f32 %v518_v0, %v473_v61  ;;  %v774_v2 = vpop.f32.mrb[13].mxu0 }
 0x177   : > { %v521_v3 = vpop.f32.mrb[14].mxu0 }
 0x178   : > { %v575_v4 = vadd.f32 %v569_v55, %v524_v1  ;;  %v775_v5 = vpop.f32.mrb[15].mxu0 }
 0x17d   : > { %v620_v6 = vpop.f32.mrb[16].mxu0 }
 0x17e   : > { %v626_v8 = vadd.f32 %v620_v6, %v575_v4  ;;  %v786_v9 = vpop.f32.mrb[17].mxu0 }
 0x17f   : > { %v623_v10 = vpop.f32.mrb[18].mxu0 }
 0x180   : > { %v633_v11 = vadd.f32 %v631_v7, %v626_v8  ;;  %v787_v12 = vpop.f32.mrb[19].mxu0 }
 0x182   : > { %635 = vst.msk [vmem:[%s165_s24] sm:$0xff] %vm634_vm3, %v633_v11 }
 0x183 PF: > { %s13_s12 = sadd.s32 1, %s815_s12  }
 0x184   : > { %p10_p4 = scmp.ge.s32.totalorder %s13_s12, 4  }
 0x186   :  { %12 = sbr.rel (!%p10_p4) target bundleno = 1 (0x1), region = 70 }

</bundles_post_ra>
